<compile_context>
chip_gen: v7x
topology: tpu7x:2x2x1
jax: 0.10.0
libtpu: 0.0.40
codegen_flags: <defaults>
</compile_context>

<pallas_src>
import jax
import jax.numpy as jnp
from jax.experimental import pallas as pl
from jax.experimental.pallas import tpu as pltpu

# MXU-native operand dtype on v5e/v6e/v7x; accumulation stays f32 everywhere.
DOT_DTYPE = jnp.bfloat16


def _full_spec(shape):
    """BlockSpec covering the entire array (grid=(1,))."""
    nd = len(shape)
    return pl.BlockSpec(shape, lambda i, nd=nd: (0,) * nd)


def make_kernel(num_layers, B, T, E, H, O):
    def kernel(*refs):
        emb_ref = refs[0]                          # (T*B, E) bf16, rows = t*B + b
        layer_refs = refs[1:1 + 3 * num_layers]    # [W_ih^T, W_hh^T, bias] * L
        label_w_ref = refs[1 + 3 * num_layers]     # (H, O) bf16
        label_b_ref = refs[2 + 3 * num_layers]     # (1, O) f32
        out_ref = refs[3 + 3 * num_layers]         # (B, O) f32
        gx_ref = refs[4 + 3 * num_layers]          # VMEM scratch (T*B, 4H) f32

        x_slab = emb_ref[...]                      # (T*B, in_dim) bf16
        hs = None                                  # vreg-resident h_t list

        # ---- stacked LSTM (batch_first in torch; time-major slab here) ----
        for l in range(num_layers):
            w_ih = layer_refs[3 * l][...]          # (in_dim, 4H) bf16, cols [i,f,o,g]
            w_hh = layer_refs[3 * l + 1][...]      # (H, 4H)      bf16, cols [i,f,o,g]
            bias = layer_refs[3 * l + 2][...]      # (1, 4H)      f32

            # Phase 1: ONE fused input projection for the whole layer,
            # off the serial dependence chain (bias broadcast happens once).
            gx_ref[...] = (jnp.dot(x_slab, w_ih,
                                   preferred_element_type=jnp.float32)
                           + bias)                 # (T*B, 4H) f32

            # Phase 2: recurrence — one MXU dot per step (skipped at t=0 since
            # h0 = 0); h_t kept in vregs, no lane-sparse seq stores.
            hs = []
            h = None
            c = None
            for t in range(T):
                g_in = gx_ref[pl.ds(t * B, B), :]                 # (B, 4H) f32
                if t == 0:
                    gates = g_in
                else:
                    gates = (jnp.dot(h.astype(DOT_DTYPE), w_hh,
                                     preferred_element_type=jnp.float32)
                             + g_in)
                # one wide sigmoid for [i | f | o], one tanh for g
                sig = jax.nn.sigmoid(gates[:, :3 * H])
                g_g = jnp.tanh(gates[:, 3 * H:])
                i_g = sig[:, 0 * H:1 * H]
                f_g = sig[:, 1 * H:2 * H]
                o_g = sig[:, 2 * H:3 * H]
                c = i_g * g_g if t == 0 else f_g * c + i_g * g_g
                h = o_g * jnp.tanh(c)
                hs.append(h)

            if l < num_layers - 1:
                # Next layer's fused-projection input: time-major (T*B, H) slab.
                x_slab = jnp.concatenate(hs, axis=0).astype(DOT_DTYPE)

        # ---- attention_mec + final linear (all vreg-resident) ----
        h_last = hs[-1]                                           # == hidden[-1], (B, H)
        scores = [jnp.sum(hs[t] * h_last, axis=-1, keepdims=True)
                  for t in range(T)]                              # each (B, 1)
        m = scores[0]
        for t in range(1, T):
            m = jnp.maximum(m, scores[t])
        exps = [jnp.exp(s - m) for s in scores]
        denom = exps[0]
        for t in range(1, T):
            denom = denom + exps[t]
        inv = pl.reciprocal(denom, approx=True)                   # EUP, off the VPU
        new_hidden = (exps[0] * inv) * hs[0]
        for t in range(1, T):
            new_hidden = new_hidden + (exps[t] * inv) * hs[t]     # (B, H)

        out_ref[...] = (jnp.dot(new_hidden.astype(DOT_DTYPE), label_w_ref[...],
                                preferred_element_type=jnp.float32)
                        + label_b_ref[...])                       # (B, O)

    return kernel


def _reorder_gates(w):
    """Reorder PyTorch gate blocks [i, f, g, o] -> [i, f, o, g] along axis 0."""
    i, f, g, o = jnp.split(w, 4, axis=0)
    return jnp.concatenate([i, f, o, g], axis=0)


def lstm_sarcasm_attn_forward(tweet, tweet_batch_len, params,
                              num_layers, hidden_size, output_size):
    """Pallas implementation of LSTMSarcasmAttn.forward.

    tweet_batch_len is accepted but unused, matching the torch forward
    (which never packs the sequence).
    """
    del tweet_batch_len  # unused, same as the reference forward
    emb_table = params['embedding']                       # (V, E)
    # Embedding gather is glue (data-dependent row gather) done in plain JAX.
    emb = jnp.take(emb_table, tweet, axis=0)              # (B, T, E)
    B, T, E = emb.shape
    H, O = hidden_size, output_size
    # Time-major (T*B, E) slab so each layer's input projection is ONE matmul.
    emb_slab = jnp.transpose(emb, (1, 0, 2)).reshape(T * B, E).astype(DOT_DTYPE)

    inputs = [emb_slab]
    in_specs = [_full_spec(emb_slab.shape)]
    for l in range(num_layers):
        w_ih_t = _reorder_gates(params[f'w_ih_{l}']).T.astype(DOT_DTYPE)   # (in_dim, 4H)
        w_hh_t = _reorder_gates(params[f'w_hh_{l}']).T.astype(DOT_DTYPE)   # (H, 4H)
        b = _reorder_gates(params[f'b_ih_{l}'] + params[f'b_hh_{l}'])
        b = b[None, :].astype(jnp.float32)                                 # (1, 4H)
        for arr in (w_ih_t, w_hh_t, b):
            inputs.append(arr)
            in_specs.append(_full_spec(arr.shape))
    label_w = params['label_w'].T.astype(DOT_DTYPE)               # (H, O)
    label_b = params['label_b'][None, :].astype(jnp.float32)      # (1, O)
    inputs += [label_w, label_b]
    in_specs += [_full_spec(label_w.shape), _full_spec(label_b.shape)]

    # TODO(synk): at production batch sizes add a batch-parallel grid axis
    # (dimension_semantics=("parallel", "arbitrary")) so v7x uses both
    # TensorCores and the per-tile VMEM budget stays generation-independent.
    out = pl.pallas_call(
        make_kernel(num_layers, B, T, E, H, O),
        grid=(1,),
        in_specs=in_specs,
        out_specs=_full_spec((B, O)),
        out_shape=jax.ShapeDtypeStruct((B, O), jnp.float32),
        scratch_shapes=[pltpu.VMEM((T * B, 4 * H), jnp.float32)],  # fused input projection
        compiler_params=pltpu.CompilerParams(
            dimension_semantics=("arbitrary",),
            vmem_limit_bytes=32 * 1024 * 1024),
    )(*inputs)

    # torch.squeeze(final_output, 1): only drops dim 1 if it has size 1
    return out[:, 0] if O == 1 else out


def reference_forward(tweet, params, num_layers, H, O):
    """Pure-JAX f32 reference (PyTorch gate order) for correctness checking."""
    emb = jnp.take(params['embedding'], tweet, axis=0)    # (B, T, E)
    x = emb.astype(jnp.float32)
    B = x.shape[0]
    for l in range(num_layers):
        w_ih = params[f'w_ih_{l}']
        w_hh = params[f'w_hh_{l}']
        b = params[f'b_ih_{l}'] + params[f'b_hh_{l}']

        def cell(carry, x_t, w_ih=w_ih, w_hh=w_hh, b=b):
            h, c = carry
            g = x_t @ w_ih.T + h @ w_hh.T + b
            i = jax.nn.sigmoid(g[:, :H])
            f = jax.nn.sigmoid(g[:, H:2 * H])
            gg = jnp.tanh(g[:, 2 * H:3 * H])
            o = jax.nn.sigmoid(g[:, 3 * H:4 * H])
            c = f * c + i * gg
            h = o * jnp.tanh(c)
            return (h, c), h

        init = (jnp.zeros((B, H), jnp.float32), jnp.zeros((B, H), jnp.float32))
        _, ys = jax.lax.scan(cell, init, jnp.transpose(x, (1, 0, 2)))
        x = jnp.transpose(ys, (1, 0, 2))                  # (B, T, H)

    output = x
    hidden = output[:, -1, :]                             # hidden[-1]
    attn = jnp.einsum('bth,bh->bt', output, hidden)
    soft = jax.nn.softmax(attn, axis=1)
    new_hidden = jnp.einsum('bth,bt->bh', output, soft)
    out = new_hidden @ params['label_w'].T + params['label_b']
    return out[:, 0] if O == 1 else out


if __name__ == "__main__":
    # Small shapes consistent with the module's forward.
    output_size, hidden_size, vocab_size, embedding_length, num_layers = 1, 32, 50, 32, 2
    B, T = 2, 8

    key = jax.random.PRNGKey(0)
    keys = iter(jax.random.split(key, 32))
    params = {
        'embedding': jax.random.normal(next(keys), (vocab_size, embedding_length),
                                       jnp.float32) * 0.1,
    }
    for l in range(num_layers):
        in_dim = embedding_length if l == 0 else hidden_size
        params[f'w_ih_{l}'] = jax.random.normal(next(keys), (4 * hidden_size, in_dim),
                                                jnp.float32) * 0.1
        params[f'w_hh_{l}'] = jax.random.normal(next(keys), (4 * hidden_size, hidden_size),
                                                jnp.float32) * 0.1
        params[f'b_ih_{l}'] = jax.random.normal(next(keys), (4 * hidden_size,),
                                                jnp.float32) * 0.1
        params[f'b_hh_{l}'] = jax.random.normal(next(keys), (4 * hidden_size,),
                                                jnp.float32) * 0.1
    params['label_w'] = jax.random.normal(next(keys), (output_size, hidden_size),
                                          jnp.float32) * 0.1
    params['label_b'] = jax.random.normal(next(keys), (output_size,),
                                          jnp.float32) * 0.1

    tweet = jax.random.randint(next(keys), (B, T), 0, vocab_size, dtype=jnp.int32)
    tweet_batch_len = jnp.full((B,), T, dtype=jnp.int32)  # unused, like the torch forward

    out = lstm_sarcasm_attn_forward(tweet, tweet_batch_len, params,
                                    num_layers, hidden_size, output_size)
    out = jax.block_until_ready(out)

    ref = reference_forward(tweet, params, num_layers, hidden_size, output_size)
    assert out.shape == (B,), out.shape
    # bf16 matmul operands + approx reciprocal introduce ~1e-4..1e-3 deviation
    # vs. the all-f32 reference; well within the 5e-3 tolerance.
    assert jnp.allclose(out, ref, atol=5e-3, rtol=5e-3), (out, ref)
    print("KERNEL_OK")
</pallas_src>

<mosaic_0001>
module attributes {stable_mosaic.version = 11 : i64} {
  func.func @kernel(%arg0: i32, %arg1: memref<16x32xbf16, #tpu.memory_space<vmem>>, %arg2: memref<32x128xbf16, #tpu.memory_space<vmem>>, %arg3: memref<32x128xbf16, #tpu.memory_space<vmem>>, %arg4: memref<1x128xf32, #tpu.memory_space<vmem>>, %arg5: memref<32x128xbf16, #tpu.memory_space<vmem>>, %arg6: memref<32x128xbf16, #tpu.memory_space<vmem>>, %arg7: memref<1x128xf32, #tpu.memory_space<vmem>>, %arg8: memref<32x1xbf16, #tpu.memory_space<vmem>>, %arg9: memref<1x1xf32, #tpu.memory_space<vmem>>, %arg10: memref<2x1xf32, #tpu.memory_space<vmem>>, %arg11: memref<16x128xf32, #tpu.memory_space<vmem>>) attributes {dimension_semantics = [#tpu.dimension_semantics<arbitrary>], iteration_bounds = array<i64: 1>, scalar_prefetch = 0 : i64, scratch_operands = 1 : i64, tpu.core_type = #tpu.core_type<tc>, window_params = [{pipeline_mode = #tpu.pipeline_mode<synchronous>, transform_indices = @transform_0, window_bounds = array<i64: 16, 32>}, {pipeline_mode = #tpu.pipeline_mode<synchronous>, transform_indices = @transform_1, window_bounds = array<i64: 32, 128>}, {pipeline_mode = #tpu.pipeline_mode<synchronous>, transform_indices = @transform_2, window_bounds = array<i64: 32, 128>}, {pipeline_mode = #tpu.pipeline_mode<synchronous>, transform_indices = @transform_3, window_bounds = array<i64: 1, 128>}, {pipeline_mode = #tpu.pipeline_mode<synchronous>, transform_indices = @transform_4, window_bounds = array<i64: 32, 128>}, {pipeline_mode = #tpu.pipeline_mode<synchronous>, transform_indices = @transform_5, window_bounds = array<i64: 32, 128>}, {pipeline_mode = #tpu.pipeline_mode<synchronous>, transform_indices = @transform_6, window_bounds = array<i64: 1, 128>}, {pipeline_mode = #tpu.pipeline_mode<synchronous>, transform_indices = @transform_7, window_bounds = array<i64: 32, 1>}, {pipeline_mode = #tpu.pipeline_mode<synchronous>, transform_indices = @transform_8, window_bounds = array<i64: 1, 1>}, {pipeline_mode = #tpu.pipeline_mode<synchronous>, transform_indices = @transform_9, window_bounds = array<i64: 2, 1>}]} {
    %c0 = arith.constant 0 : index
    %c0_0 = arith.constant 0 : index
    %0 = vector.load %arg1[%c0, %c0_0] : memref<16x32xbf16, #tpu.memory_space<vmem>>, vector<16x32xbf16>
    %c0_1 = arith.constant 0 : index
    %c0_2 = arith.constant 0 : index
    %1 = vector.load %arg2[%c0_1, %c0_2] : memref<32x128xbf16, #tpu.memory_space<vmem>>, vector<32x128xbf16>
    %c0_3 = arith.constant 0 : index
    %c0_4 = arith.constant 0 : index
    %2 = vector.load %arg3[%c0_3, %c0_4] : memref<32x128xbf16, #tpu.memory_space<vmem>>, vector<32x128xbf16>
    %c0_5 = arith.constant 0 : index
    %c0_6 = arith.constant 0 : index
    %3 = vector.load %arg4[%c0_5, %c0_6] : memref<1x128xf32, #tpu.memory_space<vmem>>, vector<1x128xf32>
    %cst = arith.constant dense<0.000000e+00> : vector<16x128xf32>
    %4 = tpu.matmul %0, %1, %cst {dimension_numbers = #tpu.dot_dimension_numbers<[1], [0], [0], [1], [0, 0, 1, 1], [], []>} : vector<16x32xbf16>, vector<32x128xbf16>, vector<16x128xf32> -> vector<16x128xf32>
    %5 = vector.broadcast %3 : vector<1x128xf32> to vector<16x128xf32>
    %6 = arith.addf %4, %5 : vector<16x128xf32>
    %c0_7 = arith.constant 0 : index
    %c0_8 = arith.constant 0 : index
    %7 = vector.load %arg11[%c0_7, %c0_8] : memref<16x128xf32, #tpu.memory_space<vmem>>, vector<16x128xf32>
    tpu.vector_store %arg11[%c0_7, %c0_8], %6 {strides = array<i32>} : memref<16x128xf32, #tpu.memory_space<vmem>>, vector<16x128xf32>,
    %c0_9 = arith.constant 0 : index
    %c0_10 = arith.constant 0 : index
    %8 = vector.load %arg11[%c0_9, %c0_10] : memref<16x128xf32, #tpu.memory_space<vmem>>, vector<2x128xf32>
    %9 = vector.extract_strided_slice %8 {offsets = [0, 0], sizes = [2, 96], strides = [1, 1]} : vector<2x128xf32> to vector<2x96xf32>
    %10 = arith.negf %9 : vector<2x96xf32>
    %11 = math.exp %10 : vector<2x96xf32>
    %cst_11 = arith.constant 1.000000e+00 : f32
    %12 = vector.broadcast %cst_11 : f32 to vector<2x96xf32>
    %13 = arith.addf %12, %11 : vector<2x96xf32>
    %14 = arith.divf %12, %13 : vector<2x96xf32>
    %15 = vector.extract_strided_slice %8 {offsets = [0, 96], sizes = [2, 32], strides = [1, 1]} : vector<2x128xf32> to vector<2x32xf32>
    %16 = math.tanh %15 : vector<2x32xf32>
    %17 = vector.extract_strided_slice %14 {offsets = [0, 0], sizes = [2, 32], strides = [1, 1]} : vector<2x96xf32> to vector<2x32xf32>
    %18 = vector.extract_strided_slice %14 {offsets = [0, 64], sizes = [2, 32], strides = [1, 1]} : vector<2x96xf32> to vector<2x32xf32>
    %19 = arith.mulf %17, %16 : vector<2x32xf32>
    %20 = math.tanh %19 : vector<2x32xf32>
    %21 = arith.mulf %18, %20 : vector<2x32xf32>
    %c2 = arith.constant 2 : index
    %c0_12 = arith.constant 0 : index
    %22 = vector.load %arg11[%c2, %c0_12] : memref<16x128xf32, #tpu.memory_space<vmem>>, vector<2x128xf32>
    %23 = arith.truncf %21 : vector<2x32xf32> to vector<2x32xbf16>
    %cst_13 = arith.constant dense<0.000000e+00> : vector<2x128xf32>
    %24 = tpu.matmul %23, %2, %cst_13 {dimension_numbers = #tpu.dot_dimension_numbers<[1], [0], [0], [1], [0, 0, 1, 1], [], []>} : vector<2x32xbf16>, vector<32x128xbf16>, vector<2x128xf32> -> vector<2x128xf32>
    %25 = arith.addf %24, %22 : vector<2x128xf32>
    %26 = vector.extract_strided_slice %25 {offsets = [0, 0], sizes = [2, 96], strides = [1, 1]} : vector<2x128xf32> to vector<2x96xf32>
    %27 = arith.negf %26 : vector<2x96xf32>
    %28 = math.exp %27 : vector<2x96xf32>
    %cst_14 = arith.constant 1.000000e+00 : f32
    %29 = vector.broadcast %cst_14 : f32 to vector<2x96xf32>
    %30 = arith.addf %29, %28 : vector<2x96xf32>
    %31 = arith.divf %29, %30 : vector<2x96xf32>
    %32 = vector.extract_strided_slice %25 {offsets = [0, 96], sizes = [2, 32], strides = [1, 1]} : vector<2x128xf32> to vector<2x32xf32>
    %33 = math.tanh %32 : vector<2x32xf32>
    %34 = vector.extract_strided_slice %31 {offsets = [0, 0], sizes = [2, 32], strides = [1, 1]} : vector<2x96xf32> to vector<2x32xf32>
    %35 = vector.extract_strided_slice %31 {offsets = [0, 32], sizes = [2, 32], strides = [1, 1]} : vector<2x96xf32> to vector<2x32xf32>
    %36 = vector.extract_strided_slice %31 {offsets = [0, 64], sizes = [2, 32], strides = [1, 1]} : vector<2x96xf32> to vector<2x32xf32>
    %37 = arith.mulf %35, %19 : vector<2x32xf32>
    %38 = arith.mulf %34, %33 : vector<2x32xf32>
    %39 = arith.addf %37, %38 : vector<2x32xf32>
    %40 = math.tanh %39 : vector<2x32xf32>
    %41 = arith.mulf %36, %40 : vector<2x32xf32>
    %c4 = arith.constant 4 : index
    %c0_15 = arith.constant 0 : index
    %42 = vector.load %arg11[%c4, %c0_15] : memref<16x128xf32, #tpu.memory_space<vmem>>, vector<2x128xf32>
    %43 = arith.truncf %41 : vector<2x32xf32> to vector<2x32xbf16>
    %cst_16 = arith.constant dense<0.000000e+00> : vector<2x128xf32>
    %44 = tpu.matmul %43, %2, %cst_16 {dimension_numbers = #tpu.dot_dimension_numbers<[1], [0], [0], [1], [0, 0, 1, 1], [], []>} : vector<2x32xbf16>, vector<32x128xbf16>, vector<2x128xf32> -> vector<2x128xf32>
    %45 = arith.addf %44, %42 : vector<2x128xf32>
    %46 = vector.extract_strided_slice %45 {offsets = [0, 0], sizes = [2, 96], strides = [1, 1]} : vector<2x128xf32> to vector<2x96xf32>
    %47 = arith.negf %46 : vector<2x96xf32>
    %48 = math.exp %47 : vector<2x96xf32>
    %cst_17 = arith.constant 1.000000e+00 : f32
    %49 = vector.broadcast %cst_17 : f32 to vector<2x96xf32>
    %50 = arith.addf %49, %48 : vector<2x96xf32>
    %51 = arith.divf %49, %50 : vector<2x96xf32>
    %52 = vector.extract_strided_slice %45 {offsets = [0, 96], sizes = [2, 32], strides = [1, 1]} : vector<2x128xf32> to vector<2x32xf32>
    %53 = math.tanh %52 : vector<2x32xf32>
    %54 = vector.extract_strided_slice %51 {offsets = [0, 0], sizes = [2, 32], strides = [1, 1]} : vector<2x96xf32> to vector<2x32xf32>
    %55 = vector.extract_strided_slice %51 {offsets = [0, 32], sizes = [2, 32], strides = [1, 1]} : vector<2x96xf32> to vector<2x32xf32>
    %56 = vector.extract_strided_slice %51 {offsets = [0, 64], sizes = [2, 32], strides = [1, 1]} : vector<2x96xf32> to vector<2x32xf32>
    %57 = arith.mulf %55, %39 : vector<2x32xf32>
    %58 = arith.mulf %54, %53 : vector<2x32xf32>
    %59 = arith.addf %57, %58 : vector<2x32xf32>
    %60 = math.tanh %59 : vector<2x32xf32>
    %61 = arith.mulf %56, %60 : vector<2x32xf32>
    %c6 = arith.constant 6 : index
    %c0_18 = arith.constant 0 : index
    %62 = vector.load %arg11[%c6, %c0_18] : memref<16x128xf32, #tpu.memory_space<vmem>>, vector<2x128xf32>
    %63 = arith.truncf %61 : vector<2x32xf32> to vector<2x32xbf16>
    %cst_19 = arith.constant dense<0.000000e+00> : vector<2x128xf32>
    %64 = tpu.matmul %63, %2, %cst_19 {dimension_numbers = #tpu.dot_dimension_numbers<[1], [0], [0], [1], [0, 0, 1, 1], [], []>} : vector<2x32xbf16>, vector<32x128xbf16>, vector<2x128xf32> -> vector<2x128xf32>
    %65 = arith.addf %64, %62 : vector<2x128xf32>
    %66 = vector.extract_strided_slice %65 {offsets = [0, 0], sizes = [2, 96], strides = [1, 1]} : vector<2x128xf32> to vector<2x96xf32>
    %67 = arith.negf %66 : vector<2x96xf32>
    %68 = math.exp %67 : vector<2x96xf32>
    %cst_20 = arith.constant 1.000000e+00 : f32
    %69 = vector.broadcast %cst_20 : f32 to vector<2x96xf32>
    %70 = arith.addf %69, %68 : vector<2x96xf32>
    %71 = arith.divf %69, %70 : vector<2x96xf32>
    %72 = vector.extract_strided_slice %65 {offsets = [0, 96], sizes = [2, 32], strides = [1, 1]} : vector<2x128xf32> to vector<2x32xf32>
    %73 = math.tanh %72 : vector<2x32xf32>
    %74 = vector.extract_strided_slice %71 {offsets = [0, 0], sizes = [2, 32], strides = [1, 1]} : vector<2x96xf32> to vector<2x32xf32>
    %75 = vector.extract_strided_slice %71 {offsets = [0, 32], sizes = [2, 32], strides = [1, 1]} : vector<2x96xf32> to vector<2x32xf32>
    %76 = vector.extract_strided_slice %71 {offsets = [0, 64], sizes = [2, 32], strides = [1, 1]} : vector<2x96xf32> to vector<2x32xf32>
    %77 = arith.mulf %75, %59 : vector<2x32xf32>
    %78 = arith.mulf %74, %73 : vector<2x32xf32>
    %79 = arith.addf %77, %78 : vector<2x32xf32>
    %80 = math.tanh %79 : vector<2x32xf32>
    %81 = arith.mulf %76, %80 : vector<2x32xf32>
    %c8 = arith.constant 8 : index
    %c0_21 = arith.constant 0 : index
    %82 = vector.load %arg11[%c8, %c0_21] : memref<16x128xf32, #tpu.memory_space<vmem>>, vector<2x128xf32>
    %83 = arith.truncf %81 : vector<2x32xf32> to vector<2x32xbf16>
    %cst_22 = arith.constant dense<0.000000e+00> : vector<2x128xf32>
    %84 = tpu.matmul %83, %2, %cst_22 {dimension_numbers = #tpu.dot_dimension_numbers<[1], [0], [0], [1], [0, 0, 1, 1], [], []>} : vector<2x32xbf16>, vector<32x128xbf16>, vector<2x128xf32> -> vector<2x128xf32>
    %85 = arith.addf %84, %82 : vector<2x128xf32>
    %86 = vector.extract_strided_slice %85 {offsets = [0, 0], sizes = [2, 96], strides = [1, 1]} : vector<2x128xf32> to vector<2x96xf32>
    %87 = arith.negf %86 : vector<2x96xf32>
    %88 = math.exp %87 : vector<2x96xf32>
    %cst_23 = arith.constant 1.000000e+00 : f32
    %89 = vector.broadcast %cst_23 : f32 to vector<2x96xf32>
    %90 = arith.addf %89, %88 : vector<2x96xf32>
    %91 = arith.divf %89, %90 : vector<2x96xf32>
    %92 = vector.extract_strided_slice %85 {offsets = [0, 96], sizes = [2, 32], strides = [1, 1]} : vector<2x128xf32> to vector<2x32xf32>
    %93 = math.tanh %92 : vector<2x32xf32>
    %94 = vector.extract_strided_slice %91 {offsets = [0, 0], sizes = [2, 32], strides = [1, 1]} : vector<2x96xf32> to vector<2x32xf32>
    %95 = vector.extract_strided_slice %91 {offsets = [0, 32], sizes = [2, 32], strides = [1, 1]} : vector<2x96xf32> to vector<2x32xf32>
    %96 = vector.extract_strided_slice %91 {offsets = [0, 64], sizes = [2, 32], strides = [1, 1]} : vector<2x96xf32> to vector<2x32xf32>
    %97 = arith.mulf %95, %79 : vector<2x32xf32>
    %98 = arith.mulf %94, %93 : vector<2x32xf32>
    %99 = arith.addf %97, %98 : vector<2x32xf32>
    %100 = math.tanh %99 : vector<2x32xf32>
    %101 = arith.mulf %96, %100 : vector<2x32xf32>
    %c10 = arith.constant 10 : index
    %c0_24 = arith.constant 0 : index
    %102 = vector.load %arg11[%c10, %c0_24] : memref<16x128xf32, #tpu.memory_space<vmem>>, vector<2x128xf32>
    %103 = arith.truncf %101 : vector<2x32xf32> to vector<2x32xbf16>
    %cst_25 = arith.constant dense<0.000000e+00> : vector<2x128xf32>
    %104 = tpu.matmul %103, %2, %cst_25 {dimension_numbers = #tpu.dot_dimension_numbers<[1], [0], [0], [1], [0, 0, 1, 1], [], []>} : vector<2x32xbf16>, vector<32x128xbf16>, vector<2x128xf32> -> vector<2x128xf32>
    %105 = arith.addf %104, %102 : vector<2x128xf32>
    %106 = vector.extract_strided_slice %105 {offsets = [0, 0], sizes = [2, 96], strides = [1, 1]} : vector<2x128xf32> to vector<2x96xf32>
    %107 = arith.negf %106 : vector<2x96xf32>
    %108 = math.exp %107 : vector<2x96xf32>
    %cst_26 = arith.constant 1.000000e+00 : f32
    %109 = vector.broadcast %cst_26 : f32 to vector<2x96xf32>
    %110 = arith.addf %109, %108 : vector<2x96xf32>
    %111 = arith.divf %109, %110 : vector<2x96xf32>
    %112 = vector.extract_strided_slice %105 {offsets = [0, 96], sizes = [2, 32], strides = [1, 1]} : vector<2x128xf32> to vector<2x32xf32>
    %113 = math.tanh %112 : vector<2x32xf32>
    %114 = vector.extract_strided_slice %111 {offsets = [0, 0], sizes = [2, 32], strides = [1, 1]} : vector<2x96xf32> to vector<2x32xf32>
    %115 = vector.extract_strided_slice %111 {offsets = [0, 32], sizes = [2, 32], strides = [1, 1]} : vector<2x96xf32> to vector<2x32xf32>
    %116 = vector.extract_strided_slice %111 {offsets = [0, 64], sizes = [2, 32], strides = [1, 1]} : vector<2x96xf32> to vector<2x32xf32>
    %117 = arith.mulf %115, %99 : vector<2x32xf32>
    %118 = arith.mulf %114, %113 : vector<2x32xf32>
    %119 = arith.addf %117, %118 : vector<2x32xf32>
    %120 = math.tanh %119 : vector<2x32xf32>
    %121 = arith.mulf %116, %120 : vector<2x32xf32>
    %c12 = arith.constant 12 : index
    %c0_27 = arith.constant 0 : index
    %122 = vector.load %arg11[%c12, %c0_27] : memref<16x128xf32, #tpu.memory_space<vmem>>, vector<2x128xf32>
    %123 = arith.truncf %121 : vector<2x32xf32> to vector<2x32xbf16>
    %cst_28 = arith.constant dense<0.000000e+00> : vector<2x128xf32>
    %124 = tpu.matmul %123, %2, %cst_28 {dimension_numbers = #tpu.dot_dimension_numbers<[1], [0], [0], [1], [0, 0, 1, 1], [], []>} : vector<2x32xbf16>, vector<32x128xbf16>, vector<2x128xf32> -> vector<2x128xf32>
    %125 = arith.addf %124, %122 : vector<2x128xf32>
    %126 = vector.extract_strided_slice %125 {offsets = [0, 0], sizes = [2, 96], strides = [1, 1]} : vector<2x128xf32> to vector<2x96xf32>
    %127 = arith.negf %126 : vector<2x96xf32>
    %128 = math.exp %127 : vector<2x96xf32>
    %cst_29 = arith.constant 1.000000e+00 : f32
    %129 = vector.broadcast %cst_29 : f32 to vector<2x96xf32>
    %130 = arith.addf %129, %128 : vector<2x96xf32>
    %131 = arith.divf %129, %130 : vector<2x96xf32>
    %132 = vector.extract_strided_slice %125 {offsets = [0, 96], sizes = [2, 32], strides = [1, 1]} : vector<2x128xf32> to vector<2x32xf32>
    %133 = math.tanh %132 : vector<2x32xf32>
    %134 = vector.extract_strided_slice %131 {offsets = [0, 0], sizes = [2, 32], strides = [1, 1]} : vector<2x96xf32> to vector<2x32xf32>
    %135 = vector.extract_strided_slice %131 {offsets = [0, 32], sizes = [2, 32], strides = [1, 1]} : vector<2x96xf32> to vector<2x32xf32>
    %136 = vector.extract_strided_slice %131 {offsets = [0, 64], sizes = [2, 32], strides = [1, 1]} : vector<2x96xf32> to vector<2x32xf32>
    %137 = arith.mulf %135, %119 : vector<2x32xf32>
    %138 = arith.mulf %134, %133 : vector<2x32xf32>
    %139 = arith.addf %137, %138 : vector<2x32xf32>
    %140 = math.tanh %139 : vector<2x32xf32>
    %141 = arith.mulf %136, %140 : vector<2x32xf32>
    %c14 = arith.constant 14 : index
    %c0_30 = arith.constant 0 : index
    %142 = vector.load %arg11[%c14, %c0_30] : memref<16x128xf32, #tpu.memory_space<vmem>>, vector<2x128xf32>
    %143 = arith.truncf %141 : vector<2x32xf32> to vector<2x32xbf16>
    %cst_31 = arith.constant dense<0.000000e+00> : vector<2x128xf32>
    %144 = tpu.matmul %143, %2, %cst_31 {dimension_numbers = #tpu.dot_dimension_numbers<[1], [0], [0], [1], [0, 0, 1, 1], [], []>} : vector<2x32xbf16>, vector<32x128xbf16>, vector<2x128xf32> -> vector<2x128xf32>
    %145 = arith.addf %144, %142 : vector<2x128xf32>
    %146 = vector.extract_strided_slice %145 {offsets = [0, 0], sizes = [2, 96], strides = [1, 1]} : vector<2x128xf32> to vector<2x96xf32>
    %147 = arith.negf %146 : vector<2x96xf32>
    %148 = math.exp %147 : vector<2x96xf32>
    %cst_32 = arith.constant 1.000000e+00 : f32
    %149 = vector.broadcast %cst_32 : f32 to vector<2x96xf32>
    %150 = arith.addf %149, %148 : vector<2x96xf32>
    %151 = arith.divf %149, %150 : vector<2x96xf32>
    %152 = vector.extract_strided_slice %145 {offsets = [0, 96], sizes = [2, 32], strides = [1, 1]} : vector<2x128xf32> to vector<2x32xf32>
    %153 = math.tanh %152 : vector<2x32xf32>
    %154 = vector.extract_strided_slice %151 {offsets = [0, 0], sizes = [2, 32], strides = [1, 1]} : vector<2x96xf32> to vector<2x32xf32>
    %155 = vector.extract_strided_slice %151 {offsets = [0, 32], sizes = [2, 32], strides = [1, 1]} : vector<2x96xf32> to vector<2x32xf32>
    %156 = vector.extract_strided_slice %151 {offsets = [0, 64], sizes = [2, 32], strides = [1, 1]} : vector<2x96xf32> to vector<2x32xf32>
    %157 = arith.mulf %155, %139 : vector<2x32xf32>
    %158 = arith.mulf %154, %153 : vector<2x32xf32>
    %159 = arith.addf %157, %158 : vector<2x32xf32>
    %160 = math.tanh %159 : vector<2x32xf32>
    %161 = arith.mulf %156, %160 : vector<2x32xf32>
    %162 = tpu.concatenate %21, %41, %61, %81, %101, %121, %141, %161 in 0 : vector<2x32xf32>, vector<2x32xf32>, vector<2x32xf32>, vector<2x32xf32>, vector<2x32xf32>, vector<2x32xf32>, vector<2x32xf32>, vector<2x32xf32> -> vector<16x32xf32>
    %163 = arith.truncf %162 : vector<16x32xf32> to vector<16x32xbf16>
    %c0_33 = arith.constant 0 : index
    %c0_34 = arith.constant 0 : index
    %164 = vector.load %arg5[%c0_33, %c0_34] : memref<32x128xbf16, #tpu.memory_space<vmem>>, vector<32x128xbf16>
    %c0_35 = arith.constant 0 : index
    %c0_36 = arith.constant 0 : index
    %165 = vector.load %arg6[%c0_35, %c0_36] : memref<32x128xbf16, #tpu.memory_space<vmem>>, vector<32x128xbf16>
    %c0_37 = arith.constant 0 : index
    %c0_38 = arith.constant 0 : index
    %166 = vector.load %arg7[%c0_37, %c0_38] : memref<1x128xf32, #tpu.memory_space<vmem>>, vector<1x128xf32>
    %cst_39 = arith.constant dense<0.000000e+00> : vector<16x128xf32>
    %167 = tpu.matmul %163, %164, %cst_39 {dimension_numbers = #tpu.dot_dimension_numbers<[1], [0], [0], [1], [0, 0, 1, 1], [], []>} : vector<16x32xbf16>, vector<32x128xbf16>, vector<16x128xf32> -> vector<16x128xf32>
    %168 = vector.broadcast %166 : vector<1x128xf32> to vector<16x128xf32>
    %169 = arith.addf %167, %168 : vector<16x128xf32>
    %c0_40 = arith.constant 0 : index
    %c0_41 = arith.constant 0 : index
    %170 = vector.load %arg11[%c0_40, %c0_41] : memref<16x128xf32, #tpu.memory_space<vmem>>, vector<16x128xf32>
    tpu.vector_store %arg11[%c0_40, %c0_41], %169 {strides = array<i32>} : memref<16x128xf32, #tpu.memory_space<vmem>>, vector<16x128xf32>,
    %c0_42 = arith.constant 0 : index
    %c0_43 = arith.constant 0 : index
    %171 = vector.load %arg11[%c0_42, %c0_43] : memref<16x128xf32, #tpu.memory_space<vmem>>, vector<2x128xf32>
    %172 = vector.extract_strided_slice %171 {offsets = [0, 0], sizes = [2, 96], strides = [1, 1]} : vector<2x128xf32> to vector<2x96xf32>
    %173 = arith.negf %172 : vector<2x96xf32>
    %174 = math.exp %173 : vector<2x96xf32>
    %cst_44 = arith.constant 1.000000e+00 : f32
    %175 = vector.broadcast %cst_44 : f32 to vector<2x96xf32>
    %176 = arith.addf %175, %174 : vector<2x96xf32>
    %177 = arith.divf %175, %176 : vector<2x96xf32>
    %178 = vector.extract_strided_slice %171 {offsets = [0, 96], sizes = [2, 32], strides = [1, 1]} : vector<2x128xf32> to vector<2x32xf32>
    %179 = math.tanh %178 : vector<2x32xf32>
    %180 = vector.extract_strided_slice %177 {offsets = [0, 0], sizes = [2, 32], strides = [1, 1]} : vector<2x96xf32> to vector<2x32xf32>
    %181 = vector.extract_strided_slice %177 {offsets = [0, 64], sizes = [2, 32], strides = [1, 1]} : vector<2x96xf32> to vector<2x32xf32>
    %182 = arith.mulf %180, %179 : vector<2x32xf32>
    %183 = math.tanh %182 : vector<2x32xf32>
    %184 = arith.mulf %181, %183 : vector<2x32xf32>
    %c2_45 = arith.constant 2 : index
    %c0_46 = arith.constant 0 : index
    %185 = vector.load %arg11[%c2_45, %c0_46] : memref<16x128xf32, #tpu.memory_space<vmem>>, vector<2x128xf32>
    %186 = arith.truncf %184 : vector<2x32xf32> to vector<2x32xbf16>
    %cst_47 = arith.constant dense<0.000000e+00> : vector<2x128xf32>
    %187 = tpu.matmul %186, %165, %cst_47 {dimension_numbers = #tpu.dot_dimension_numbers<[1], [0], [0], [1], [0, 0, 1, 1], [], []>} : vector<2x32xbf16>, vector<32x128xbf16>, vector<2x128xf32> -> vector<2x128xf32>
    %188 = arith.addf %187, %185 : vector<2x128xf32>
    %189 = vector.extract_strided_slice %188 {offsets = [0, 0], sizes = [2, 96], strides = [1, 1]} : vector<2x128xf32> to vector<2x96xf32>
    %190 = arith.negf %189 : vector<2x96xf32>
    %191 = math.exp %190 : vector<2x96xf32>
    %cst_48 = arith.constant 1.000000e+00 : f32
    %192 = vector.broadcast %cst_48 : f32 to vector<2x96xf32>
    %193 = arith.addf %192, %191 : vector<2x96xf32>
    %194 = arith.divf %192, %193 : vector<2x96xf32>
    %195 = vector.extract_strided_slice %188 {offsets = [0, 96], sizes = [2, 32], strides = [1, 1]} : vector<2x128xf32> to vector<2x32xf32>
    %196 = math.tanh %195 : vector<2x32xf32>
    %197 = vector.extract_strided_slice %194 {offsets = [0, 0], sizes = [2, 32], strides = [1, 1]} : vector<2x96xf32> to vector<2x32xf32>
    %198 = vector.extract_strided_slice %194 {offsets = [0, 32], sizes = [2, 32], strides = [1, 1]} : vector<2x96xf32> to vector<2x32xf32>
    %199 = vector.extract_strided_slice %194 {offsets = [0, 64], sizes = [2, 32], strides = [1, 1]} : vector<2x96xf32> to vector<2x32xf32>
    %200 = arith.mulf %198, %182 : vector<2x32xf32>
    %201 = arith.mulf %197, %196 : vector<2x32xf32>
    %202 = arith.addf %200, %201 : vector<2x32xf32>
    %203 = math.tanh %202 : vector<2x32xf32>
    %204 = arith.mulf %199, %203 : vector<2x32xf32>
    %c4_49 = arith.constant 4 : index
    %c0_50 = arith.constant 0 : index
    %205 = vector.load %arg11[%c4_49, %c0_50] : memref<16x128xf32, #tpu.memory_space<vmem>>, vector<2x128xf32>
    %206 = arith.truncf %204 : vector<2x32xf32> to vector<2x32xbf16>
    %cst_51 = arith.constant dense<0.000000e+00> : vector<2x128xf32>
    %207 = tpu.matmul %206, %165, %cst_51 {dimension_numbers = #tpu.dot_dimension_numbers<[1], [0], [0], [1], [0, 0, 1, 1], [], []>} : vector<2x32xbf16>, vector<32x128xbf16>, vector<2x128xf32> -> vector<2x128xf32>
    %208 = arith.addf %207, %205 : vector<2x128xf32>
    %209 = vector.extract_strided_slice %208 {offsets = [0, 0], sizes = [2, 96], strides = [1, 1]} : vector<2x128xf32> to vector<2x96xf32>
    %210 = arith.negf %209 : vector<2x96xf32>
    %211 = math.exp %210 : vector<2x96xf32>
    %cst_52 = arith.constant 1.000000e+00 : f32
    %212 = vector.broadcast %cst_52 : f32 to vector<2x96xf32>
    %213 = arith.addf %212, %211 : vector<2x96xf32>
    %214 = arith.divf %212, %213 : vector<2x96xf32>
    %215 = vector.extract_strided_slice %208 {offsets = [0, 96], sizes = [2, 32], strides = [1, 1]} : vector<2x128xf32> to vector<2x32xf32>
    %216 = math.tanh %215 : vector<2x32xf32>
    %217 = vector.extract_strided_slice %214 {offsets = [0, 0], sizes = [2, 32], strides = [1, 1]} : vector<2x96xf32> to vector<2x32xf32>
    %218 = vector.extract_strided_slice %214 {offsets = [0, 32], sizes = [2, 32], strides = [1, 1]} : vector<2x96xf32> to vector<2x32xf32>
    %219 = vector.extract_strided_slice %214 {offsets = [0, 64], sizes = [2, 32], strides = [1, 1]} : vector<2x96xf32> to vector<2x32xf32>
    %220 = arith.mulf %218, %202 : vector<2x32xf32>
    %221 = arith.mulf %217, %216 : vector<2x32xf32>
    %222 = arith.addf %220, %221 : vector<2x32xf32>
    %223 = math.tanh %222 : vector<2x32xf32>
    %224 = arith.mulf %219, %223 : vector<2x32xf32>
    %c6_53 = arith.constant 6 : index
    %c0_54 = arith.constant 0 : index
    %225 = vector.load %arg11[%c6_53, %c0_54] : memref<16x128xf32, #tpu.memory_space<vmem>>, vector<2x128xf32>
    %226 = arith.truncf %224 : vector<2x32xf32> to vector<2x32xbf16>
    %cst_55 = arith.constant dense<0.000000e+00> : vector<2x128xf32>
    %227 = tpu.matmul %226, %165, %cst_55 {dimension_numbers = #tpu.dot_dimension_numbers<[1], [0], [0], [1], [0, 0, 1, 1], [], []>} : vector<2x32xbf16>, vector<32x128xbf16>, vector<2x128xf32> -> vector<2x128xf32>
    %228 = arith.addf %227, %225 : vector<2x128xf32>
    %229 = vector.extract_strided_slice %228 {offsets = [0, 0], sizes = [2, 96], strides = [1, 1]} : vector<2x128xf32> to vector<2x96xf32>
    %230 = arith.negf %229 : vector<2x96xf32>
    %231 = math.exp %230 : vector<2x96xf32>
    %cst_56 = arith.constant 1.000000e+00 : f32
    %232 = vector.broadcast %cst_56 : f32 to vector<2x96xf32>
    %233 = arith.addf %232, %231 : vector<2x96xf32>
    %234 = arith.divf %232, %233 : vector<2x96xf32>
    %235 = vector.extract_strided_slice %228 {offsets = [0, 96], sizes = [2, 32], strides = [1, 1]} : vector<2x128xf32> to vector<2x32xf32>
    %236 = math.tanh %235 : vector<2x32xf32>
    %237 = vector.extract_strided_slice %234 {offsets = [0, 0], sizes = [2, 32], strides = [1, 1]} : vector<2x96xf32> to vector<2x32xf32>
    %238 = vector.extract_strided_slice %234 {offsets = [0, 32], sizes = [2, 32], strides = [1, 1]} : vector<2x96xf32> to vector<2x32xf32>
    %239 = vector.extract_strided_slice %234 {offsets = [0, 64], sizes = [2, 32], strides = [1, 1]} : vector<2x96xf32> to vector<2x32xf32>
    %240 = arith.mulf %238, %222 : vector<2x32xf32>
    %241 = arith.mulf %237, %236 : vector<2x32xf32>
    %242 = arith.addf %240, %241 : vector<2x32xf32>
    %243 = math.tanh %242 : vector<2x32xf32>
    %244 = arith.mulf %239, %243 : vector<2x32xf32>
    %c8_57 = arith.constant 8 : index
    %c0_58 = arith.constant 0 : index
    %245 = vector.load %arg11[%c8_57, %c0_58] : memref<16x128xf32, #tpu.memory_space<vmem>>, vector<2x128xf32>
    %246 = arith.truncf %244 : vector<2x32xf32> to vector<2x32xbf16>
    %cst_59 = arith.constant dense<0.000000e+00> : vector<2x128xf32>
    %247 = tpu.matmul %246, %165, %cst_59 {dimension_numbers = #tpu.dot_dimension_numbers<[1], [0], [0], [1], [0, 0, 1, 1], [], []>} : vector<2x32xbf16>, vector<32x128xbf16>, vector<2x128xf32> -> vector<2x128xf32>
    %248 = arith.addf %247, %245 : vector<2x128xf32>
    %249 = vector.extract_strided_slice %248 {offsets = [0, 0], sizes = [2, 96], strides = [1, 1]} : vector<2x128xf32> to vector<2x96xf32>
    %250 = arith.negf %249 : vector<2x96xf32>
    %251 = math.exp %250 : vector<2x96xf32>
    %cst_60 = arith.constant 1.000000e+00 : f32
    %252 = vector.broadcast %cst_60 : f32 to vector<2x96xf32>
    %253 = arith.addf %252, %251 : vector<2x96xf32>
    %254 = arith.divf %252, %253 : vector<2x96xf32>
    %255 = vector.extract_strided_slice %248 {offsets = [0, 96], sizes = [2, 32], strides = [1, 1]} : vector<2x128xf32> to vector<2x32xf32>
    %256 = math.tanh %255 : vector<2x32xf32>
    %257 = vector.extract_strided_slice %254 {offsets = [0, 0], sizes = [2, 32], strides = [1, 1]} : vector<2x96xf32> to vector<2x32xf32>
    %258 = vector.extract_strided_slice %254 {offsets = [0, 32], sizes = [2, 32], strides = [1, 1]} : vector<2x96xf32> to vector<2x32xf32>
    %259 = vector.extract_strided_slice %254 {offsets = [0, 64], sizes = [2, 32], strides = [1, 1]} : vector<2x96xf32> to vector<2x32xf32>
    %260 = arith.mulf %258, %242 : vector<2x32xf32>
    %261 = arith.mulf %257, %256 : vector<2x32xf32>
    %262 = arith.addf %260, %261 : vector<2x32xf32>
    %263 = math.tanh %262 : vector<2x32xf32>
    %264 = arith.mulf %259, %263 : vector<2x32xf32>
    %c10_61 = arith.constant 10 : index
    %c0_62 = arith.constant 0 : index
    %265 = vector.load %arg11[%c10_61, %c0_62] : memref<16x128xf32, #tpu.memory_space<vmem>>, vector<2x128xf32>
    %266 = arith.truncf %264 : vector<2x32xf32> to vector<2x32xbf16>
    %cst_63 = arith.constant dense<0.000000e+00> : vector<2x128xf32>
    %267 = tpu.matmul %266, %165, %cst_63 {dimension_numbers = #tpu.dot_dimension_numbers<[1], [0], [0], [1], [0, 0, 1, 1], [], []>} : vector<2x32xbf16>, vector<32x128xbf16>, vector<2x128xf32> -> vector<2x128xf32>
    %268 = arith.addf %267, %265 : vector<2x128xf32>
    %269 = vector.extract_strided_slice %268 {offsets = [0, 0], sizes = [2, 96], strides = [1, 1]} : vector<2x128xf32> to vector<2x96xf32>
    %270 = arith.negf %269 : vector<2x96xf32>
    %271 = math.exp %270 : vector<2x96xf32>
    %cst_64 = arith.constant 1.000000e+00 : f32
    %272 = vector.broadcast %cst_64 : f32 to vector<2x96xf32>
    %273 = arith.addf %272, %271 : vector<2x96xf32>
    %274 = arith.divf %272, %273 : vector<2x96xf32>
    %275 = vector.extract_strided_slice %268 {offsets = [0, 96], sizes = [2, 32], strides = [1, 1]} : vector<2x128xf32> to vector<2x32xf32>
    %276 = math.tanh %275 : vector<2x32xf32>
    %277 = vector.extract_strided_slice %274 {offsets = [0, 0], sizes = [2, 32], strides = [1, 1]} : vector<2x96xf32> to vector<2x32xf32>
    %278 = vector.extract_strided_slice %274 {offsets = [0, 32], sizes = [2, 32], strides = [1, 1]} : vector<2x96xf32> to vector<2x32xf32>
    %279 = vector.extract_strided_slice %274 {offsets = [0, 64], sizes = [2, 32], strides = [1, 1]} : vector<2x96xf32> to vector<2x32xf32>
    %280 = arith.mulf %278, %262 : vector<2x32xf32>
    %281 = arith.mulf %277, %276 : vector<2x32xf32>
    %282 = arith.addf %280, %281 : vector<2x32xf32>
    %283 = math.tanh %282 : vector<2x32xf32>
    %284 = arith.mulf %279, %283 : vector<2x32xf32>
    %c12_65 = arith.constant 12 : index
    %c0_66 = arith.constant 0 : index
    %285 = vector.load %arg11[%c12_65, %c0_66] : memref<16x128xf32, #tpu.memory_space<vmem>>, vector<2x128xf32>
    %286 = arith.truncf %284 : vector<2x32xf32> to vector<2x32xbf16>
    %cst_67 = arith.constant dense<0.000000e+00> : vector<2x128xf32>
    %287 = tpu.matmul %286, %165, %cst_67 {dimension_numbers = #tpu.dot_dimension_numbers<[1], [0], [0], [1], [0, 0, 1, 1], [], []>} : vector<2x32xbf16>, vector<32x128xbf16>, vector<2x128xf32> -> vector<2x128xf32>
    %288 = arith.addf %287, %285 : vector<2x128xf32>
    %289 = vector.extract_strided_slice %288 {offsets = [0, 0], sizes = [2, 96], strides = [1, 1]} : vector<2x128xf32> to vector<2x96xf32>
    %290 = arith.negf %289 : vector<2x96xf32>
    %291 = math.exp %290 : vector<2x96xf32>
    %cst_68 = arith.constant 1.000000e+00 : f32
    %292 = vector.broadcast %cst_68 : f32 to vector<2x96xf32>
    %293 = arith.addf %292, %291 : vector<2x96xf32>
    %294 = arith.divf %292, %293 : vector<2x96xf32>
    %295 = vector.extract_strided_slice %288 {offsets = [0, 96], sizes = [2, 32], strides = [1, 1]} : vector<2x128xf32> to vector<2x32xf32>
    %296 = math.tanh %295 : vector<2x32xf32>
    %297 = vector.extract_strided_slice %294 {offsets = [0, 0], sizes = [2, 32], strides = [1, 1]} : vector<2x96xf32> to vector<2x32xf32>
    %298 = vector.extract_strided_slice %294 {offsets = [0, 32], sizes = [2, 32], strides = [1, 1]} : vector<2x96xf32> to vector<2x32xf32>
    %299 = vector.extract_strided_slice %294 {offsets = [0, 64], sizes = [2, 32], strides = [1, 1]} : vector<2x96xf32> to vector<2x32xf32>
    %300 = arith.mulf %298, %282 : vector<2x32xf32>
    %301 = arith.mulf %297, %296 : vector<2x32xf32>
    %302 = arith.addf %300, %301 : vector<2x32xf32>
    %303 = math.tanh %302 : vector<2x32xf32>
    %304 = arith.mulf %299, %303 : vector<2x32xf32>
    %c14_69 = arith.constant 14 : index
    %c0_70 = arith.constant 0 : index
    %305 = vector.load %arg11[%c14_69, %c0_70] : memref<16x128xf32, #tpu.memory_space<vmem>>, vector<2x128xf32>
    %306 = arith.truncf %304 : vector<2x32xf32> to vector<2x32xbf16>
    %cst_71 = arith.constant dense<0.000000e+00> : vector<2x128xf32>
    %307 = tpu.matmul %306, %165, %cst_71 {dimension_numbers = #tpu.dot_dimension_numbers<[1], [0], [0], [1], [0, 0, 1, 1], [], []>} : vector<2x32xbf16>, vector<32x128xbf16>, vector<2x128xf32> -> vector<2x128xf32>
    %308 = arith.addf %307, %305 : vector<2x128xf32>
    %309 = vector.extract_strided_slice %308 {offsets = [0, 0], sizes = [2, 96], strides = [1, 1]} : vector<2x128xf32> to vector<2x96xf32>
    %310 = arith.negf %309 : vector<2x96xf32>
    %311 = math.exp %310 : vector<2x96xf32>
    %cst_72 = arith.constant 1.000000e+00 : f32
    %312 = vector.broadcast %cst_72 : f32 to vector<2x96xf32>
    %313 = arith.addf %312, %311 : vector<2x96xf32>
    %314 = arith.divf %312, %313 : vector<2x96xf32>
    %315 = vector.extract_strided_slice %308 {offsets = [0, 96], sizes = [2, 32], strides = [1, 1]} : vector<2x128xf32> to vector<2x32xf32>
    %316 = math.tanh %315 : vector<2x32xf32>
    %317 = vector.extract_strided_slice %314 {offsets = [0, 0], sizes = [2, 32], strides = [1, 1]} : vector<2x96xf32> to vector<2x32xf32>
    %318 = vector.extract_strided_slice %314 {offsets = [0, 32], sizes = [2, 32], strides = [1, 1]} : vector<2x96xf32> to vector<2x32xf32>
    %319 = vector.extract_strided_slice %314 {offsets = [0, 64], sizes = [2, 32], strides = [1, 1]} : vector<2x96xf32> to vector<2x32xf32>
    %320 = arith.mulf %318, %302 : vector<2x32xf32>
    %321 = arith.mulf %317, %316 : vector<2x32xf32>
    %322 = arith.addf %320, %321 : vector<2x32xf32>
    %323 = math.tanh %322 : vector<2x32xf32>
    %324 = arith.mulf %319, %323 : vector<2x32xf32>
    %325 = arith.mulf %184, %324 : vector<2x32xf32>
    %cst_73 = arith.constant dense<0.000000e+00> : vector<2xf32>
    %326 = vector.multi_reduction <add>, %325, %cst_73 [1] : vector<2x32xf32> to vector<2xf32>
    %327 = vector.shape_cast %326 : vector<2xf32> to vector<2x1xf32>
    %328 = arith.mulf %204, %324 : vector<2x32xf32>
    %cst_74 = arith.constant dense<0.000000e+00> : vector<2xf32>
    %329 = vector.multi_reduction <add>, %328, %cst_74 [1] : vector<2x32xf32> to vector<2xf32>
    %330 = vector.shape_cast %329 : vector<2xf32> to vector<2x1xf32>
    %331 = arith.mulf %224, %324 : vector<2x32xf32>
    %cst_75 = arith.constant dense<0.000000e+00> : vector<2xf32>
    %332 = vector.multi_reduction <add>, %331, %cst_75 [1] : vector<2x32xf32> to vector<2xf32>
    %333 = vector.shape_cast %332 : vector<2xf32> to vector<2x1xf32>
    %334 = arith.mulf %244, %324 : vector<2x32xf32>
    %cst_76 = arith.constant dense<0.000000e+00> : vector<2xf32>
    %335 = vector.multi_reduction <add>, %334, %cst_76 [1] : vector<2x32xf32> to vector<2xf32>
    %336 = vector.shape_cast %335 : vector<2xf32> to vector<2x1xf32>
    %337 = arith.mulf %264, %324 : vector<2x32xf32>
    %cst_77 = arith.constant dense<0.000000e+00> : vector<2xf32>
    %338 = vector.multi_reduction <add>, %337, %cst_77 [1] : vector<2x32xf32> to vector<2xf32>
    %339 = vector.shape_cast %338 : vector<2xf32> to vector<2x1xf32>
    %340 = arith.mulf %284, %324 : vector<2x32xf32>
    %cst_78 = arith.constant dense<0.000000e+00> : vector<2xf32>
    %341 = vector.multi_reduction <add>, %340, %cst_78 [1] : vector<2x32xf32> to vector<2xf32>
    %342 = vector.shape_cast %341 : vector<2xf32> to vector<2x1xf32>
    %343 = arith.mulf %304, %324 : vector<2x32xf32>
    %cst_79 = arith.constant dense<0.000000e+00> : vector<2xf32>
    %344 = vector.multi_reduction <add>, %343, %cst_79 [1] : vector<2x32xf32> to vector<2xf32>
    %345 = vector.shape_cast %344 : vector<2xf32> to vector<2x1xf32>
    %346 = arith.mulf %324, %324 : vector<2x32xf32>
    %cst_80 = arith.constant dense<0.000000e+00> : vector<2xf32>
    %347 = vector.multi_reduction <add>, %346, %cst_80 [1] : vector<2x32xf32> to vector<2xf32>
    %348 = vector.shape_cast %347 : vector<2xf32> to vector<2x1xf32>
    %349 = arith.maximumf %327, %330 : vector<2x1xf32>
    %350 = arith.maximumf %349, %333 : vector<2x1xf32>
    %351 = arith.maximumf %350, %336 : vector<2x1xf32>
    %352 = arith.maximumf %351, %339 : vector<2x1xf32>
    %353 = arith.maximumf %352, %342 : vector<2x1xf32>
    %354 = arith.maximumf %353, %345 : vector<2x1xf32>
    %355 = arith.maximumf %354, %348 : vector<2x1xf32>
    %356 = arith.subf %327, %355 : vector<2x1xf32>
    %357 = math.exp %356 : vector<2x1xf32>
    %358 = arith.subf %330, %355 : vector<2x1xf32>
    %359 = math.exp %358 : vector<2x1xf32>
    %360 = arith.subf %333, %355 : vector<2x1xf32>
    %361 = math.exp %360 : vector<2x1xf32>
    %362 = arith.subf %336, %355 : vector<2x1xf32>
    %363 = math.exp %362 : vector<2x1xf32>
    %364 = arith.subf %339, %355 : vector<2x1xf32>
    %365 = math.exp %364 : vector<2x1xf32>
    %366 = arith.subf %342, %355 : vector<2x1xf32>
    %367 = math.exp %366 : vector<2x1xf32>
    %368 = arith.subf %345, %355 : vector<2x1xf32>
    %369 = math.exp %368 : vector<2x1xf32>
    %370 = arith.subf %348, %355 : vector<2x1xf32>
    %371 = math.exp %370 : vector<2x1xf32>
    %372 = arith.addf %357, %359 : vector<2x1xf32>
    %373 = arith.addf %372, %361 : vector<2x1xf32>
    %374 = arith.addf %373, %363 : vector<2x1xf32>
    %375 = arith.addf %374, %365 : vector<2x1xf32>
    %376 = arith.addf %375, %367 : vector<2x1xf32>
    %377 = arith.addf %376, %369 : vector<2x1xf32>
    %378 = arith.addf %377, %371 : vector<2x1xf32>
    %379 = tpu.reciprocal %378 {approx = true} : vector<2x1xf32> -> vector<2x1xf32>
    %380 = arith.mulf %357, %379 : vector<2x1xf32>
    %381 = vector.broadcast %380 : vector<2x1xf32> to vector<2x32xf32>
    %382 = arith.mulf %381, %184 : vector<2x32xf32>
    %383 = arith.mulf %359, %379 : vector<2x1xf32>
    %384 = vector.broadcast %383 : vector<2x1xf32> to vector<2x32xf32>
    %385 = arith.mulf %384, %204 : vector<2x32xf32>
    %386 = arith.addf %382, %385 : vector<2x32xf32>
    %387 = arith.mulf %361, %379 : vector<2x1xf32>
    %388 = vector.broadcast %387 : vector<2x1xf32> to vector<2x32xf32>
    %389 = arith.mulf %388, %224 : vector<2x32xf32>
    %390 = arith.addf %386, %389 : vector<2x32xf32>
    %391 = arith.mulf %363, %379 : vector<2x1xf32>
    %392 = vector.broadcast %391 : vector<2x1xf32> to vector<2x32xf32>
    %393 = arith.mulf %392, %244 : vector<2x32xf32>
    %394 = arith.addf %390, %393 : vector<2x32xf32>
    %395 = arith.mulf %365, %379 : vector<2x1xf32>
    %396 = vector.broadcast %395 : vector<2x1xf32> to vector<2x32xf32>
    %397 = arith.mulf %396, %264 : vector<2x32xf32>
    %398 = arith.addf %394, %397 : vector<2x32xf32>
    %399 = arith.mulf %367, %379 : vector<2x1xf32>
    %400 = vector.broadcast %399 : vector<2x1xf32> to vector<2x32xf32>
    %401 = arith.mulf %400, %284 : vector<2x32xf32>
    %402 = arith.addf %398, %401 : vector<2x32xf32>
    %403 = arith.mulf %369, %379 : vector<2x1xf32>
    %404 = vector.broadcast %403 : vector<2x1xf32> to vector<2x32xf32>
    %405 = arith.mulf %404, %304 : vector<2x32xf32>
    %406 = arith.addf %402, %405 : vector<2x32xf32>
    %407 = arith.mulf %371, %379 : vector<2x1xf32>
    %408 = vector.broadcast %407 : vector<2x1xf32> to vector<2x32xf32>
    %409 = arith.mulf %408, %324 : vector<2x32xf32>
    %410 = arith.addf %406, %409 : vector<2x32xf32>
    %411 = arith.truncf %410 : vector<2x32xf32> to vector<2x32xbf16>
    %c0_81 = arith.constant 0 : index
    %c0_82 = arith.constant 0 : index
    %412 = vector.load %arg8[%c0_81, %c0_82] : memref<32x1xbf16, #tpu.memory_space<vmem>>, vector<32x1xbf16>
    %cst_83 = arith.constant dense<0.000000e+00> : vector<2x1xf32>
    %413 = tpu.matmul %411, %412, %cst_83 {dimension_numbers = #tpu.dot_dimension_numbers<[1], [0], [0], [1], [0, 0, 1, 1], [], []>} : vector<2x32xbf16>, vector<32x1xbf16>, vector<2x1xf32> -> vector<2x1xf32>
    %c0_84 = arith.constant 0 : index
    %c0_85 = arith.constant 0 : index
    %414 = vector.load %arg9[%c0_84, %c0_85] : memref<1x1xf32, #tpu.memory_space<vmem>>, vector<1x1xf32>
    %415 = vector.broadcast %414 : vector<1x1xf32> to vector<2x1xf32>
    %416 = arith.addf %413, %415 : vector<2x1xf32>
    %c0_86 = arith.constant 0 : index
    %c0_87 = arith.constant 0 : index
    %417 = vector.load %arg10[%c0_86, %c0_87] : memref<2x1xf32, #tpu.memory_space<vmem>>, vector<2x1xf32>
    tpu.vector_store %arg10[%c0_86, %c0_87], %416 {strides = array<i32>} : memref<2x1xf32, #tpu.memory_space<vmem>>, vector<2x1xf32>,
    return
  }
  func.func @transform_0(%arg0: i32) -> (i32, i32) {
    %c0_i32 = arith.constant 0 : i32
    %c0_i32_0 = arith.constant 0 : i32
    %c0_i32_1 = arith.constant 0 : i32
    return %c0_i32, %c0_i32_0 : i32, i32
  }
  func.func @transform_1(%arg0: i32) -> (i32, i32) {
    %c0_i32 = arith.constant 0 : i32
    %c0_i32_0 = arith.constant 0 : i32
    %c0_i32_1 = arith.constant 0 : i32
    return %c0_i32, %c0_i32_0 : i32, i32
  }
  func.func @transform_2(%arg0: i32) -> (i32, i32) {
    %c0_i32 = arith.constant 0 : i32
    %c0_i32_0 = arith.constant 0 : i32
    %c0_i32_1 = arith.constant 0 : i32
    return %c0_i32, %c0_i32_0 : i32, i32
  }
  func.func @transform_3(%arg0: i32) -> (i32, i32) {
    %c0_i32 = arith.constant 0 : i32
    %c0_i32_0 = arith.constant 0 : i32
    %c0_i32_1 = arith.constant 0 : i32
    return %c0_i32, %c0_i32_0 : i32, i32
  }
  func.func @transform_4(%arg0: i32) -> (i32, i32) {
    %c0_i32 = arith.constant 0 : i32
    %c0_i32_0 = arith.constant 0 : i32
    %c0_i32_1 = arith.constant 0 : i32
    return %c0_i32, %c0_i32_0 : i32, i32
  }
  func.func @transform_5(%arg0: i32) -> (i32, i32) {
    %c0_i32 = arith.constant 0 : i32
    %c0_i32_0 = arith.constant 0 : i32
    %c0_i32_1 = arith.constant 0 : i32
    return %c0_i32, %c0_i32_0 : i32, i32
  }
  func.func @transform_6(%arg0: i32) -> (i32, i32) {
    %c0_i32 = arith.constant 0 : i32
    %c0_i32_0 = arith.constant 0 : i32
    %c0_i32_1 = arith.constant 0 : i32
    return %c0_i32, %c0_i32_0 : i32, i32
  }
  func.func @transform_7(%arg0: i32) -> (i32, i32) {
    %c0_i32 = arith.constant 0 : i32
    %c0_i32_0 = arith.constant 0 : i32
    %c0_i32_1 = arith.constant 0 : i32
    return %c0_i32, %c0_i32_0 : i32, i32
  }
  func.func @transform_8(%arg0: i32) -> (i32, i32) {
    %c0_i32 = arith.constant 0 : i32
    %c0_i32_0 = arith.constant 0 : i32
    %c0_i32_1 = arith.constant 0 : i32
    return %c0_i32, %c0_i32_0 : i32, i32
  }
  func.func @transform_9(%arg0: i32) -> (i32, i32) {
    %c0_i32 = arith.constant 0 : i32
    %c0_i32_0 = arith.constant 0 : i32
    %c0_i32_1 = arith.constant 0 : i32
    return %c0_i32, %c0_i32_0 : i32, i32
  }
}

</mosaic_0001>

<bundles_post_ra>
// kernel: tpu_custom_call.1
= control target key start
LH: loop header
LB: loop body
LE: loop exit
PB: predicated region body
PF: predicated region fallthrough
CT: control target
= control target key end

     0   :  { %s2482_s0 = inlined_call_operand.hbm [shape: bf16[16,32], index: 0, kind: input, shape index: {}]   ;;  %s2483_s1 = inlined_call_operand.vmem [shape: bf16[32,128], index: 1, kind: input, shape index: {}]   ;;  %s2484_s2 = inlined_call_operand.hbm [shape: bf16[32,128], index: 2, kind: input, shape index: {}]   ;;  %s2485_s3 = inlined_call_operand.hbm [shape: f32[1,128], index: 3, kind: input, shape index: {}]   ;;  %s2486_s4 = inlined_call_operand.vmem [shape: bf16[32,128], index: 4, kind: input, shape index: {}]   ;;  %s2487_s5 = inlined_call_operand.hbm [shape: bf16[32,128], index: 5, kind: input, shape index: {}]   ;;  %s2488_s6 = inlined_call_operand.vmem [shape: f32[1,128], index: 6, kind: input, shape index: {}]   ;;  %s2489_s7 = inlined_call_operand.vmem [shape: bf16[32,1], index: 7, kind: input, shape index: {}]   ;;  %s2490_s8 = inlined_call_operand.<no memory space> [shape: f32[1,1], index: 8, kind: input, shape index: {}]   ;;  %s2491_s9 = inlined_call_operand.vmem [shape: f32[2,1], index: 9, kind: output, shape index: {}]  }
   0x1   :  { %v14_v0 = vstv %s2490_s8 }
   0x2   :  { %15 = vst [vmem:[#allocation3] sm:$0x1] %v14_v0 }
   0x3   :  { %16 = vsyncpa [#allocation5], 0 }
   0x4   :  { %17 = vsyncpa [#allocation7], 0 }
   0x5   :  { %18 = vsyncpa [#allocation10], 0  ;;  %s2051_s11 = smov [#allocation6]   ;;  %s2052_s13 = smov [#allocation4]  }
   0x6   :  { %s38_s12 = sshll.u32 %s2051_s11, 4  ;;  %s24_s14 = sshll.u32 %s2052_s13, 4  ;;  %s39_s12 = int_to_ptr.vmem [resolvable:$true] %s38_s12  ;;  %s2113_s14 = int_to_ptr.vmem [resolvable:$true] %s24_s14 }
   0x7   :  { %s1957_s17 = scalar_lea.hbm %s2484_s2, 256 }
   0x8   :  { %p1958_p0 = scmp.ne.s32.totalorder %s2484_s2, %s1957_s17  ;;  %p1961_p1 = scmp.lt.u32.totalorder %s1957_s17, %s2484_s2 }
   0xa   :  { %p1963_p2 = pnand %p1961_p1, %p1958_p0 }
   0xc   :  { %1966 = shalt.err (!%p1963_p2)
}
   0xd   :  { %s1967_s21 = scalar_lea.vmem %s39_s12, 256  ;;  %p1972_p4 = scmp.lt.s32.totalorder %s39_s12, %s39_s12 }
   0xe   :  { %p1968_p3 = scmp.ne.s32.totalorder %s39_s12, %s1967_s21  ;;  %p1973_p5 = scmp.lt.s32.totalorder %s1967_s21, %s1967_s21 }
  0x10   :  { %p1974_p6 = por %p1973_p5, %p1972_p4 }
  0x12   :  { %p1975_p7 = pnand %p1974_p6, %p1968_p3 }
  0x14   :  { %1978 = shalt.err (!%p1975_p7)
}
  0x15   :  { %s2053_s22 = smov 64   ;;  %s2054_s23 = smov 4  }
  0x16   :  { %44 = dma.hbm_to_vmem [thread:$0]  %s2484_s2, 256, %s39_s12, [#allocation7], %s2053_s22, %s2053_s22, %s2054_s23  }
  0x17   :  { %s1979_s28 = scalar_lea.hbm %s2482_s0, 128 }
  0x18   :  { %p1980_p8 = scmp.ne.s32.totalorder %s2482_s0, %s1979_s28  ;;  %p1983_p9 = scmp.lt.u32.totalorder %s1979_s28, %s2482_s0 }
  0x1a   :  { %p1985_p10 = pnand %p1983_p9, %p1980_p8 }
  0x1c   :  { %1988 = shalt.err (!%p1985_p10)
}
  0x1d   :  { %s1989_s13 = scalar_lea.vmem %s2113_s14, 128  ;;  %p1994_p12 = scmp.lt.s32.totalorder %s2113_s14, %s2113_s14 }
  0x1e   :  { %p1990_p11 = scmp.ne.s32.totalorder %s2113_s14, %s1989_s13  ;;  %p1995_p13 = scmp.lt.s32.totalorder %s1989_s13, %s1989_s13 }
  0x20   :  { %p1996_p0 = por %p1995_p13, %p1994_p12 }
  0x22   :  { %p1997_p1 = pnand %p1996_p0, %p1990_p11 }
  0x24   :  { %2000 = shalt.err (!%p1997_p1)
}
  0x25   :  { %30 = dma.hbm_to_vmem [thread:$0]  %s2482_s0, 128, %s2113_s14, [#allocation5], %s2053_s22, %s2053_s22, %s2054_s23  }
  0x26   :  { %s2055_s15 = smov [#allocation8]   ;;  %s2056_s17 = smov [#allocation9]  }
  0x27   :  { %s51_s16 = sshll.u32 %s2055_s15, 4  ;;  %s62_s18 = sshll.u32 %s2056_s17, 4  ;;  %s52_s16 = int_to_ptr.vmem [resolvable:$true] %s51_s16  ;;  %s2150_s18 = int_to_ptr.vmem [resolvable:$true] %s62_s18 }
  0x28   :  { %s2001_s20 = scalar_lea.hbm %s2485_s3, 16 }
  0x29   :  { %p2002_p2 = scmp.ne.s32.totalorder %s2485_s3, %s2001_s20  ;;  %p2005_p3 = scmp.lt.u32.totalorder %s2001_s20, %s2485_s3 }
  0x2b   :  { %p2007_p4 = pnand %p2005_p3, %p2002_p2 }
  0x2d   :  { %2010 = shalt.err (!%p2007_p4)
}
  0x2e   :  { %s2011_s0 = scalar_lea.vmem %s52_s16, 16  ;;  %s2015_s14 = scalar_lea.vmem %s52_s16, 32 }
  0x2f   :  { %p2012_p5 = scmp.ne.s32.totalorder %s52_s16, %s2011_s0  ;;  %p2016_p6 = scmp.lt.s32.totalorder %s52_s16, %s52_s16 }
  0x30   :  { %p2017_p7 = scmp.lt.s32.totalorder %s2015_s14, %s2011_s0 }
  0x32   :  { %p2018_p8 = por %p2017_p7, %p2016_p6 }
  0x34   :  { %p2019_p9 = pnand %p2018_p8, %p2012_p5 }
  0x36   :  { %2022 = shalt.err (!%p2019_p9)
}
  0x37   :  { %54 = dma.hbm_to_vmem [thread:$0]  %s2485_s3, 16, %s52_s16, [#allocation7]  }
  0x38   :  { %s2023_s10 = scalar_lea.hbm %s2487_s5, 256 }
  0x39   :  { %p2024_p10 = scmp.ne.s32.totalorder %s2487_s5, %s2023_s10  ;;  %p2027_p11 = scmp.lt.u32.totalorder %s2023_s10, %s2487_s5 }
  0x3b   :  { %p2029_p12 = pnand %p2027_p11, %p2024_p10 }
  0x3d   :  { %2032 = shalt.err (!%p2029_p12)
}
  0x3e   :  { %s2033_s15 = scalar_lea.vmem %s2150_s18, 256  ;;  %p2038_p0 = scmp.lt.s32.totalorder %s2150_s18, %s2150_s18 }
  0x3f   :  { %p2034_p13 = scmp.ne.s32.totalorder %s2150_s18, %s2033_s15  ;;  %p2039_p1 = scmp.lt.s32.totalorder %s2033_s15, %s2033_s15 }
  0x41   :  { %p2040_p2 = por %p2039_p1, %p2038_p0 }
  0x43   :  { %p2041_p3 = pnand %p2040_p2, %p2034_p13 }
  0x45   :  { %2044 = shalt.err (!%p2041_p3)
}
  0x46   :  { %68 = dma.hbm_to_vmem [thread:$0]  %s2487_s5, 256, %s2150_s18, [#allocation10], %s2053_s22, %s2053_s22, %s2054_s23  }
  0x47   :  { %2045 = dma.done.wait [#allocation5], 128  }
  0x48   :  { %2046 = vsyncadd [#allocation5], 4294967168 }
  0x49   :  { %2047 = dma.done.wait [#allocation7], 272  }
  0x4a   :  { %2048 = vsyncadd [#allocation7], 4294967024 }
  0x4b   :  { %2049 = dma.done.wait [#allocation10], 256  }
  0x4c   :  { %2050 = vsyncadd [#allocation10], 4294967040  ;;  %v2057_v1 = vmov 0.0   ;;  %vm2058_vm0 = vmmov 0   ;;  %v1800_v2 = vld [vmem:[%s2483_s1] sm:$0xff]   ;;  %v1801_v3 = vld [vmem:[%s2483_s1 + $0x8] sm:$0xff]  }
  0x4d   :  { %1655 = vmatprep.subr.bf16.mxu0 %v2057_v1  ;;  %1659 = vmatprep.mubr.msk.bf16.mxu0 %vm2058_vm0, %v2057_v1  ;;  %v1802_v4 = vld [vmem:[#allocation4] sm:$0xff]   ;;  %vm122_vm1 = vcmask 261120   ;;  %v1557_v5 = vld [vmem:[#allocation8] ss:$0 sm:$0xff]  ;;  %s2059_s1 = smov 32   ;;  %v2202_v20 = vld [vmem:[#allocation6] sm:$0xff]  }
  0x4e   :  { %1663 = vmatprep.subr.bf16.mxu1 %v2057_v1  ;;  %1667 = vmatprep.mubr.msk.bf16.mxu1 %vm2058_vm0, %v2057_v1  ;;  %v2205_v21 = vld [vmem:[#allocation6 + $0x8] sm:$0xff]   ;;  %vm726_vm2 = vcmask 1041408   ;;  %vm728_vm3 = vcmask 1043456   ;;  %vm730_vm4 = vcmask 1045504   ;;  %vm1356_vm5 = vcmask 254976  }
  0x4f   :  { %1656 = vmatpush3.bf16.msra.mxu0 %v1800_v2  ;;  %1664 = vmatpush3.bf16.msra.mxu1 %v2202_v20  ;;  %vm1548_vm6 = vcmask 1024  }
  0x50   :  { %1657 = vmatprep.subr.bf16.mxu0 %v2057_v1  ;;  %1665 = vmatprep.subr.bf16.mxu1 %v2057_v1 }
  0x53   :  { %1658 = vmatpush3.bf16.msra.mxu0 %v1801_v3  ;;  %1666 = vmatpush3.bf16.msra.mxu1 %v2205_v21 }
  0x54   :  { %1671 = vmatprep.subr.bf16.mxu0 %v2057_v1  ;;  %1679 = vmatprep.subr.bf16.mxu1 %v2057_v1 }
  0x56   :  { %1660 = vmatmul.mubr.msk.bf16.vlgmr.msra.gmra.mrb[0].mxu0 %vm122_vm1, %v1802_v4 }
  0x57   :  { %1675 = vmatprep.mubr.msk.bf16.mxu0 %vm2058_vm0, %v2057_v1  ;;  %1672 = vmatpush3.bf16.msra.mxu0 %v2202_v20 }
  0x58   :  { %1673 = vmatprep.subr.bf16.mxu0 %v2057_v1 }
  0x5b   :  { %1674 = vmatpush3.bf16.msra.mxu0 %v2205_v21 }
  0x5c   :  { %1687 = vmatprep.subr.bf16.mxu0 %v2057_v1 }
 0x129   :  { %v160_v6 = vpop.f32.mrb[0].mxu0 }
 0x12a   :  { %v161_v7 = vadd.f32 %v1557_v5, %v160_v6  ;;  %v1661_v8 = vpop.f32.mrb[1].mxu0 }
 0x12b   :  { %v163_v9 = vpop.f32.mrb[2].mxu0 }
 0x12c   :  { %167 = vst [vmem:[#allocation2] sm:$0xff] %v161_v7  ;;  %v164_v10 = vadd.f32 %v1557_v5, %v163_v9  ;;  %v1662_v11 = vpop.f32.mrb[3].mxu0 }
 0x12e   :  { %168 = vst [vmem:[#allocation2 + $0x8] sm:$0xff] %v164_v10 }
 0x133   :  { %v169_v12 = vld [vmem:[#allocation2] sm:$0x3]  ;;  %v188_v27 = vld [vmem:[#allocation2 + $0x2] sm:$0x3]  ;;  %v276_v49 = vld [vmem:[#allocation2 + $0x4] sm:$0x3] }
 0x134   :  { %1811 = vtanh.f32 %v169_v12  ;;  %v1562_v14 = vmul.f32 -1.442695, %v169_v12  ;;  %v348_v11 = vld [vmem:[#allocation2 + $0x6] sm:$0x3] }
 0x136   :  { %1813 = vpow2.f32 %v1562_v14 }
 0x13e   :  { %v1812_v13 = vpop.eup %1811 }
 0x13f   :  { %178 = vrot.lane.b32.xlu0 %v1812_v13, %s2059_s1 }
 0x140   :  { %v1814_v15 = vpop.eup %1813 }
 0x141   :  { %v173_v16 = vadd.f32 1.0, %v1814_v15 }
 0x143   :  { %1815 = vrcp.f32 %v173_v16 }
 0x14d   :  { %v1816_v17 = vpop.eup %1815 }
 0x1b1   :  { %v179_v18 = vpop.permute.xlu0 %178 }
 0x1b2   :  { %v181_v19 = vmul.f32 %v1816_v17, %v179_v18 }
 0x1b4   :  { %1817 = vtanh.f32 %v181_v19 }
 0x1be   :  { %v1818_v22 = vpop.eup %1817 }
 0x1bf   :  { %184 = vrot.lane.b32.xlu0 %v1818_v22, %s2053_s22 }
 0x1c3   :  { %256 = vrot.lane.b32.xlu0 %v181_v19, %s2059_s1 }
 0x231   :  { %v185_v23 = vpop.permute.xlu0 %184 }
 0x232   :  { %v2216_v24 = vmul.f32 %v1816_v17, %v185_v23 }
 0x234   :  { %v189_v25 = vpack.c.bf16 %v2216_v24, %v2216_v24 }
 0x235   :  { %v257_v40 = vpop.permute.xlu0 %256 }
 0x236   :  { %191 = vrot.lane.b32.xlu1 %v189_v25, %s2053_s22 }
 0x2a8   :  { %v192_v26 = vpop.permute.xlu1 %191 }
 0x2a9   :  { %1668 = vmatmul.mubr.msk.bf16.vlgmr.msra.gmra.mrb[0].mxu1 %vm122_vm1, %v192_v26 }
 0x2aa   :  { %1680 = vmatpush3.bf16.msra.mxu1 %v2202_v20  ;;  %1683 = vmatprep.mubr.msk.bf16.mxu1 %vm2058_vm0, %v2057_v1 }
 0x2ab   :  { %1681 = vmatprep.subr.bf16.mxu1 %v2057_v1 }
 0x2ae   :  { %1682 = vmatpush3.bf16.msra.mxu1 %v2205_v21 }
 0x2af   :  { %1695 = vmatprep.subr.bf16.mxu1 %v2057_v1 }
 0x37c   :  { %v242_v28 = vpop.f32.mrb[0].mxu1 }
 0x37d   :  { %v243_v29 = vadd.f32 %v242_v28, %v188_v27  ;;  %v1669_v30 = vpop.f32.mrb[1].mxu1 }
 0x37e   :  { %v245_v31 = vpop.f32.mrb[2].mxu1 }
 0x37f   :  { %1819 = vtanh.f32 %v243_v29  ;;  %v1670_v32 = vpop.f32.mrb[3].mxu1  ;;  %v1566_v34 = vmul.f32 -1.442695, %v243_v29 }
 0x381   :  { %1821 = vpow2.f32 %v1566_v34 }
 0x389   :  { %v1820_v33 = vpop.eup %1819 }
 0x38a   :  { %261 = vrot.lane.b32.xlu1 %v1820_v33, %s2059_s1 }
 0x38b   :  { %v1822_v35 = vpop.eup %1821 }
 0x38c   :  { %v251_v36 = vadd.f32 1.0, %v1822_v35 }
 0x38e   :  { %1823 = vrcp.f32 %v251_v36  ;;  %v420_v36 = vld [vmem:[#allocation2 + $0x8] sm:$0x3] }
 0x398   :  { %v1824_v37 = vpop.eup %1823 }
 0x399   :  { %v259_v41 = vmul.f32 %v1824_v37, %v257_v40 }
 0x3fc   :  { %v262_v38 = vpop.permute.xlu1 %261 }
 0x3fd   :  { %v264_v39 = vmul.f32 %v1824_v37, %v262_v38 }
 0x3ff   :  { %266 = vrot.lane.b32.xlu1 %v264_v39, %s2059_s1 }
 0x471   :  { %v267_v42 = vpop.permute.xlu1 %266 }
 0x472   :  { %v269_v43 = vadd.f32 %v267_v42, %v259_v41 }
 0x474   :  { %1825 = vtanh.f32 %v269_v43 }
 0x47e   :  { %v1826_v44 = vpop.eup %1825 }
 0x47f   :  { %272 = vrot.lane.b32.xlu0 %v1826_v44, %s2059_s1 }
 0x4f1   :  { %v273_v45 = vpop.permute.xlu0 %272 }
 0x4f2   :  { %v275_v46 = vmul.f32 %v1824_v37, %v273_v45 }
 0x4f4   :  { %v277_v47 = vpack.c.bf16 %v275_v46, %v275_v46  ;;  %v709_v3 = vrot.slane %v275_v46, 6 }
 0x4f6   :  { %279 = vrot.lane.b32.xlu1 %v277_v47, %s2053_s22  ;;  %v727_v8 = vsel %vm726_vm2, %v2216_v24, %v709_v3 }
 0x568   :  { %v280_v48 = vpop.permute.xlu1 %279 }
 0x569   :  { %1676 = vmatmul.mubr.msk.bf16.vlgmr.msra.gmra.mrb[4].mxu0 %vm122_vm1, %v280_v48 }
 0x56a   :  { %1688 = vmatpush3.bf16.msra.mxu0 %v2202_v20  ;;  %1691 = vmatprep.mubr.msk.bf16.mxu0 %vm2058_vm0, %v2057_v1 }
 0x56b   :  { %1689 = vmatprep.subr.bf16.mxu0 %v2057_v1 }
 0x56e   :  { %1690 = vmatpush3.bf16.msra.mxu0 %v2205_v21 }
 0x56f   :  { %1703 = vmatprep.subr.bf16.mxu0 %v2057_v1 }
 0x63c   :  { %v318_v50 = vpop.f32.mrb[4].mxu0 }
 0x63d   :  { %v319_v51 = vadd.f32 %v318_v50, %v276_v49  ;;  %v1677_v52 = vpop.f32.mrb[5].mxu0 }
 0x63e   :  { %v321_v53 = vpop.f32.mrb[6].mxu0 }
 0x63f   :  { %1827 = vtanh.f32 %v319_v51  ;;  %v1678_v54 = vpop.f32.mrb[7].mxu0  ;;  %v1568_v56 = vmul.f32 -1.442695, %v319_v51 }
 0x641   :  { %1829 = vpow2.f32 %v1568_v56 }
 0x649   :  { %v1828_v55 = vpop.eup %1827 }
 0x64a   :  { %333 = vrot.lane.b32.xlu0 %v1828_v55, %s2059_s1 }
 0x64b   :  { %v1830_v57 = vpop.eup %1829 }
 0x64c   :  { %v327_v58 = vadd.f32 1.0, %v1830_v57  ;;  %v492_v57 = vld [vmem:[#allocation2 + $0xa] sm:$0x3] }
 0x64e   :  { %1831 = vrcp.f32 %v327_v58 }
 0x658   :  { %v1832_v59 = vpop.eup %1831 }
 0x659   :  { %v331_v62 = vmul.f32 %v1832_v59, %v269_v43 }
 0x6bc   :  { %v334_v60 = vpop.permute.xlu0 %333 }
 0x6bd   :  { %v336_v61 = vmul.f32 %v1832_v59, %v334_v60 }
 0x6bf   :  { %338 = vrot.lane.b32.xlu1 %v336_v61, %s2059_s1 }
 0x731   :  { %v339_v63 = vpop.permute.xlu1 %338 }
 0x732   :  { %v341_v0 = vadd.f32 %v339_v63, %v331_v62 }
 0x734   :  { %1833 = vtanh.f32 %v341_v0 }
 0x73e   :  { %v1834_v2 = vpop.eup %1833 }
 0x73f   :  { %344 = vrot.lane.b32.xlu0 %v1834_v2, %s2059_s1 }
 0x7b1   :  { %v345_v4 = vpop.permute.xlu0 %344 }
 0x7b2   :  { %v347_v5 = vmul.f32 %v1832_v59, %v345_v4 }
 0x7b4   :  { %v712_v6 = vrot.slane %v347_v5, 4  ;;  %v349_v7 = vpack.c.bf16 %v347_v5, %v347_v5 }
 0x7b6   :  { %351 = vrot.lane.b32.xlu1 %v349_v7, %s2053_s22  ;;  %v729_v9 = vsel %vm728_vm3, %v727_v8, %v712_v6 }
 0x828   :  { %v352_v10 = vpop.permute.xlu1 %351 }
 0x829   :  { %1684 = vmatmul.mubr.msk.bf16.vlgmr.msra.gmra.mrb[4].mxu1 %vm122_vm1, %v352_v10 }
 0x82a   :  { %1696 = vmatpush3.bf16.msra.mxu1 %v2202_v20  ;;  %1699 = vmatprep.mubr.msk.bf16.mxu1 %vm2058_vm0, %v2057_v1 }
 0x82b   :  { %1697 = vmatprep.subr.bf16.mxu1 %v2057_v1 }
 0x82e   :  { %1698 = vmatpush3.bf16.msra.mxu1 %v2205_v21 }
 0x82f   :  { %1711 = vmatprep.subr.bf16.mxu1 %v2057_v1 }
 0x8fc   :  { %v390_v12 = vpop.f32.mrb[4].mxu1 }
 0x8fd   :  { %v391_v13 = vadd.f32 %v390_v12, %v348_v11  ;;  %v1685_v14 = vpop.f32.mrb[5].mxu1 }
 0x8fe   :  { %v393_v15 = vpop.f32.mrb[6].mxu1 }
 0x8ff   :  { %1835 = vtanh.f32 %v391_v13  ;;  %v1686_v16 = vpop.f32.mrb[7].mxu1  ;;  %v1570_v18 = vmul.f32 -1.442695, %v391_v13  ;;  %v564_v13 = vld [vmem:[#allocation2 + $0xc] sm:$0x3] }
 0x901   :  { %1837 = vpow2.f32 %v1570_v18 }
 0x909   :  { %v1836_v17 = vpop.eup %1835 }
 0x90a   :  { %405 = vrot.lane.b32.xlu0 %v1836_v17, %s2059_s1 }
 0x90b   :  { %v1838_v19 = vpop.eup %1837 }
 0x90c   :  { %v399_v22 = vadd.f32 1.0, %v1838_v19 }
 0x90e   :  { %1839 = vrcp.f32 %v399_v22 }
 0x918   :  { %v1840_v23 = vpop.eup %1839 }
 0x919   :  { %v403_v26 = vmul.f32 %v1840_v23, %v341_v0 }
 0x97c   :  { %v406_v24 = vpop.permute.xlu0 %405 }
 0x97d   :  { %v408_v25 = vmul.f32 %v1840_v23, %v406_v24 }
 0x97f   :  { %410 = vrot.lane.b32.xlu1 %v408_v25, %s2059_s1 }
 0x9f1   :  { %v411_v27 = vpop.permute.xlu1 %410 }
 0x9f2   :  { %v413_v28 = vadd.f32 %v411_v27, %v403_v26 }
 0x9f4   :  { %1841 = vtanh.f32 %v413_v28 }
 0x9fe   :  { %v1842_v29 = vpop.eup %1841 }
 0x9ff   :  { %416 = vrot.lane.b32.xlu0 %v1842_v29, %s2059_s1 }
 0xa71   :  { %v417_v30 = vpop.permute.xlu0 %416 }
 0xa72   :  { %v419_v31 = vmul.f32 %v1840_v23, %v417_v30 }
 0xa74   :  { %v715_v32 = vrot.slane %v419_v31, 2  ;;  %v421_v33 = vpack.c.bf16 %v419_v31, %v419_v31 }
 0xa76   :  { %423 = vrot.lane.b32.xlu1 %v421_v33, %s2053_s22  ;;  %v2258_v34 = vsel %vm730_vm4, %v729_v9, %v715_v32 }
 0xae8   :  { %v424_v35 = vpop.permute.xlu1 %423 }
 0xae9   :  { %1692 = vmatmul.mubr.msk.bf16.vlgmr.msra.gmra.mrb[8].mxu0 %vm122_vm1, %v424_v35 }
 0xaea   :  { %1704 = vmatpush3.bf16.msra.mxu0 %v2202_v20  ;;  %1707 = vmatprep.mubr.msk.bf16.mxu0 %vm2058_vm0, %v2057_v1 }
 0xaeb   :  { %1705 = vmatprep.subr.bf16.mxu0 %v2057_v1 }
 0xaee   :  { %1706 = vmatpush3.bf16.msra.mxu0 %v2205_v21 }
 0xaef   :  { %1719 = vmatprep.subr.bf16.mxu0 %v2057_v1 }
 0xbbc   :  { %v462_v37 = vpop.f32.mrb[8].mxu0 }
 0xbbd   :  { %v463_v38 = vadd.f32 %v462_v37, %v420_v36  ;;  %v1693_v39 = vpop.f32.mrb[9].mxu0 }
 0xbbe   :  { %v465_v40 = vpop.f32.mrb[10].mxu0 }
 0xbbf   :  { %1843 = vtanh.f32 %v463_v38  ;;  %v1694_v41 = vpop.f32.mrb[11].mxu0  ;;  %v1572_v43 = vmul.f32 -1.442695, %v463_v38 }
 0xbc0   :  { %v636_v41 = vld [vmem:[#allocation2 + $0xe] sm:$0x3] }
 0xbc1   :  { %1845 = vpow2.f32 %v1572_v43 }
 0xbc9   :  { %v1844_v42 = vpop.eup %1843 }
 0xbca   :  { %477 = vrot.lane.b32.xlu0 %v1844_v42, %s2059_s1 }
 0xbcb   :  { %v1846_v44 = vpop.eup %1845 }
 0xbcc   :  { %v471_v45 = vadd.f32 1.0, %v1846_v44 }
 0xbce   :  { %1847 = vrcp.f32 %v471_v45 }
 0xbd8   :  { %v1848_v46 = vpop.eup %1847 }
 0xbd9   :  { %v475_v49 = vmul.f32 %v1848_v46, %v413_v28 }
 0xc3c   :  { %v478_v47 = vpop.permute.xlu0 %477 }
 0xc3d   :  { %v480_v48 = vmul.f32 %v1848_v46, %v478_v47 }
 0xc3f   :  { %482 = vrot.lane.b32.xlu1 %v480_v48, %s2059_s1 }
 0xcb1   :  { %v483_v50 = vpop.permute.xlu1 %482 }
 0xcb2   :  { %v485_v51 = vadd.f32 %v483_v50, %v475_v49 }
 0xcb4   :  { %1849 = vtanh.f32 %v485_v51 }
 0xcbe   :  { %v1850_v52 = vpop.eup %1849 }
 0xcbf   :  { %488 = vrot.lane.b32.xlu0 %v1850_v52, %s2059_s1 }
 0xd31   :  { %v489_v53 = vpop.permute.xlu0 %488 }
 0xd32   :  { %v2270_v54 = vmul.f32 %v1848_v46, %v489_v53 }
 0xd34   :  { %v493_v55 = vpack.c.bf16 %v2270_v54, %v2270_v54 }
 0xd36   :  { %495 = vrot.lane.b32.xlu1 %v493_v55, %s2053_s22 }
 0xda8   :  { %v496_v56 = vpop.permute.xlu1 %495 }
 0xda9   :  { %1700 = vmatmul.mubr.msk.bf16.vlgmr.msra.gmra.mrb[8].mxu1 %vm122_vm1, %v496_v56 }
 0xdaa   :  { %1712 = vmatpush3.bf16.msra.mxu1 %v2202_v20  ;;  %1715 = vmatprep.mubr.msk.bf16.mxu1 %vm2058_vm0, %v2057_v1 }
 0xdab   :  { %1713 = vmatprep.subr.bf16.mxu1 %v2057_v1 }
 0xdae   :  { %1714 = vmatpush3.bf16.msra.mxu1 %v2205_v21 }
 0xdaf   :  { %1727 = vmatprep.subr.bf16.mxu1 %v2057_v1 }
 0xe7c   :  { %v534_v58 = vpop.f32.mrb[8].mxu1 }
 0xe7d   :  { %v535_v59 = vadd.f32 %v534_v58, %v492_v57  ;;  %v1701_v60 = vpop.f32.mrb[9].mxu1  ;;  %v1805_v57 = vld [vmem:[%s2486_s4] sm:$0xff]   ;;  %v1806_v58 = vld [vmem:[%s2486_s4 + $0x8] sm:$0xff]  }
 0xe7e   :  { %v537_v61 = vpop.f32.mrb[10].mxu1 }
 0xe7f   :  { %1851 = vtanh.f32 %v535_v59  ;;  %v1702_v62 = vpop.f32.mrb[11].mxu1  ;;  %v1574_v20 = vmul.f32 -1.442695, %v535_v59 }
 0xe81   :  { %1853 = vpow2.f32 %v1574_v20 }
 0xe89   :  { %v1852_v63 = vpop.eup %1851 }
 0xe8a   :  { %549 = vrot.lane.b32.xlu0 %v1852_v63, %s2059_s1 }
 0xe8b   :  { %v1854_v0 = vpop.eup %1853 }
 0xe8c   :  { %v543_v2 = vadd.f32 1.0, %v1854_v0 }
 0xe8e   :  { %1855 = vrcp.f32 %v543_v2  ;;  %v1579_v2 = vld [vmem:[%s2488_s6] ss:$0 sm:$0xff] }
 0xe98   :  { %v1856_v3 = vpop.eup %1855 }
 0xe99   :  { %v547_v5 = vmul.f32 %v1856_v3, %v485_v51 }
 0xefc   :  { %v550_v4 = vpop.permute.xlu0 %549 }
 0xefd   :  { %v552_v21 = vmul.f32 %v1856_v3, %v550_v4 }
 0xeff   :  { %554 = vrot.lane.b32.xlu1 %v552_v21, %s2059_s1 }
 0xf71   :  { %v555_v6 = vpop.permute.xlu1 %554 }
 0xf72   :  { %v557_v7 = vadd.f32 %v555_v6, %v547_v5 }
 0xf74   :  { %1857 = vtanh.f32 %v557_v7 }
 0xf7e   :  { %v1858_v8 = vpop.eup %1857 }
 0xf7f   :  { %560 = vrot.lane.b32.xlu0 %v1858_v8, %s2059_s1 }
 0xff1   :  { %v561_v9 = vpop.permute.xlu0 %560 }
 0xff2   :  { %v563_v10 = vmul.f32 %v1856_v3, %v561_v9 }
 0xff4   :  { %v565_v11 = vpack.c.bf16 %v563_v10, %v563_v10  ;;  %v718_v32 = vrot.slane %v563_v10, 6 }
 0xff6   :  { %567 = vrot.lane.b32.xlu1 %v565_v11, %s2053_s22  ;;  %v732_v38 = vsel %vm726_vm2, %v2270_v54, %v718_v32 }
0x1068   :  { %v568_v12 = vpop.permute.xlu1 %567 }
0x1069   :  { %1708 = vmatmul.mubr.msk.bf16.vlgmr.msra.gmra.mrb[12].mxu0 %vm122_vm1, %v568_v12 }
0x106a   :  { %1723 = vmatprep.mubr.msk.bf16.mxu0 %vm2058_vm0, %v2057_v1  ;;  %1720 = vmatpush3.bf16.msra.mxu0 %v1805_v57 }
0x106b   :  { %1721 = vmatprep.subr.bf16.mxu0 %v2057_v1 }
0x106e   :  { %1722 = vmatpush3.bf16.msra.mxu0 %v1806_v58 }
0x106f   :  { %1735 = vmatprep.subr.bf16.mxu0 %v2057_v1 }
0x113c   :  { %v606_v14 = vpop.f32.mrb[12].mxu0 }
0x113d   :  { %v607_v15 = vadd.f32 %v606_v14, %v564_v13  ;;  %v1709_v16 = vpop.f32.mrb[13].mxu0 }
0x113e   :  { %v609_v17 = vpop.f32.mrb[14].mxu0  ;;  %v2323_v16 = vld [vmem:[#allocation9 + $0x8] sm:$0xff]  }
0x113f   :  { %1859 = vtanh.f32 %v607_v15  ;;  %v1710_v18 = vpop.f32.mrb[15].mxu0  ;;  %v1576_v22 = vmul.f32 -1.442695, %v607_v15  ;;  %v2320_v15 = vld [vmem:[#allocation9] sm:$0xff]  }
0x1141   :  { %1861 = vpow2.f32 %v1576_v22 }
0x1149   :  { %v1860_v19 = vpop.eup %1859 }
0x114a   :  { %621 = vrot.lane.b32.xlu0 %v1860_v19, %s2059_s1 }
0x114b   :  { %v1862_v23 = vpop.eup %1861 }
0x114c   :  { %v615_v24 = vadd.f32 1.0, %v1862_v23 }
0x114e   :  { %1863 = vrcp.f32 %v615_v24 }
0x1158   :  { %v1864_v25 = vpop.eup %1863 }
0x1159   :  { %v619_v28 = vmul.f32 %v1864_v25, %v557_v7 }
0x11bc   :  { %v622_v26 = vpop.permute.xlu0 %621 }
0x11bd   :  { %v624_v27 = vmul.f32 %v1864_v25, %v622_v26 }
0x11bf   :  { %626 = vrot.lane.b32.xlu1 %v624_v27, %s2059_s1 }
0x1231   :  { %v627_v29 = vpop.permute.xlu1 %626 }
0x1232   :  { %v629_v30 = vadd.f32 %v627_v29, %v619_v28 }
0x1234   :  { %1865 = vtanh.f32 %v629_v30 }
0x123e   :  { %v1866_v31 = vpop.eup %1865 }
0x123f   :  { %632 = vrot.lane.b32.xlu0 %v1866_v31, %s2059_s1 }
0x12b1   :  { %v633_v33 = vpop.permute.xlu0 %632 }
0x12b2   :  { %v635_v35 = vmul.f32 %v1864_v25, %v633_v33 }
0x12b4   :  { %v721_v36 = vrot.slane %v635_v35, 4  ;;  %v637_v37 = vpack.c.bf16 %v635_v35, %v635_v35 }
0x12b6   :  { %639 = vrot.lane.b32.xlu1 %v637_v37, %s2053_s22  ;;  %v733_v39 = vsel %vm728_vm3, %v732_v38, %v721_v36 }
0x1328   :  { %v640_v40 = vpop.permute.xlu1 %639 }
0x1329   :  { %1716 = vmatmul.mubr.msk.bf16.vlgmr.msra.gmra.mrb[12].mxu1 %vm122_vm1, %v640_v40 }
0x132a   :  { %1731 = vmatprep.mubr.msk.bf16.mxu1 %vm2058_vm0, %v2057_v1  ;;  %1728 = vmatpush3.bf16.msra.mxu1 %v2320_v15 }
0x132b   :  { %1729 = vmatprep.subr.bf16.mxu1 %v2057_v1 }
0x132e   :  { %1730 = vmatpush3.bf16.msra.mxu1 %v2323_v16 }
0x132f   :  { %1743 = vmatprep.subr.bf16.mxu1 %v2057_v1 }
0x13fc   :  { %v678_v42 = vpop.f32.mrb[12].mxu1 }
0x13fd   :  { %v679_v43 = vadd.f32 %v678_v42, %v636_v41  ;;  %v1717_v44 = vpop.f32.mrb[13].mxu1 }
0x13fe   :  { %v681_v45 = vpop.f32.mrb[14].mxu1 }
0x13ff   :  { %1867 = vtanh.f32 %v679_v43  ;;  %v1718_v46 = vpop.f32.mrb[15].mxu1  ;;  %v1578_v48 = vmul.f32 -1.442695, %v679_v43 }
0x1401   :  { %1869 = vpow2.f32 %v1578_v48 }
0x1409   :  { %v1868_v47 = vpop.eup %1867 }
0x140a   :  { %693 = vrot.lane.b32.xlu0 %v1868_v47, %s2059_s1 }
0x140b   :  { %v1870_v49 = vpop.eup %1869 }
0x140c   :  { %v687_v50 = vadd.f32 1.0, %v1870_v49 }
0x140e   :  { %1871 = vrcp.f32 %v687_v50 }
0x1418   :  { %v1872_v51 = vpop.eup %1871 }
0x1419   :  { %v691_v54 = vmul.f32 %v1872_v51, %v629_v30 }
0x147c   :  { %v694_v52 = vpop.permute.xlu0 %693 }
0x147d   :  { %v696_v53 = vmul.f32 %v1872_v51, %v694_v52 }
0x147f   :  { %698 = vrot.lane.b32.xlu1 %v696_v53, %s2059_s1 }
0x14f1   :  { %v699_v55 = vpop.permute.xlu1 %698 }
0x14f2   :  { %v701_v56 = vadd.f32 %v699_v55, %v691_v54 }
0x14f4   :  { %1873 = vtanh.f32 %v701_v56 }
0x14fe   :  { %v1874_v59 = vpop.eup %1873 }
0x14ff   :  { %704 = vrot.lane.b32.xlu0 %v1874_v59, %s2059_s1 }
0x1571   :  { %v705_v60 = vpop.permute.xlu0 %704 }
0x1572   :  { %v707_v61 = vmul.f32 %v1872_v51, %v705_v60 }
0x1574   :  { %v724_v62 = vrot.slane %v707_v61, 2 }
0x1576   :  { %v734_v63 = vsel %vm730_vm4, %v733_v39, %v724_v62 }
0x1577   :  { %v735_v20 = vpack.c.bf16 %v734_v63, %v2258_v34 }
0x1579   :  { %752 = vrot.lane.b32.xlu1 %v735_v20, %s2053_s22 }
0x15eb   :  { %v753_v0 = vpop.permute.xlu1 %752 }
0x15ec   :  { %1724 = vmatmul.mubr.msk.bf16.vlgmr.msra.gmra.mrb[16].mxu0 %vm122_vm1, %v753_v0 }
0x15ed   :  { %1739 = vmatprep.mubr.msk.bf16.mxu0 %vm2058_vm0, %v2057_v1  ;;  %1736 = vmatpush3.bf16.msra.mxu0 %v2320_v15 }
0x15ee   :  { %1737 = vmatprep.subr.bf16.mxu0 %v2057_v1 }
0x15f1   :  { %1738 = vmatpush3.bf16.msra.mxu0 %v2323_v16 }
0x15f2   :  { %1751 = vmatprep.subr.bf16.mxu0 %v2057_v1 }
0x16bf   :  { %v803_v3 = vpop.f32.mrb[16].mxu0 }
0x16c0   :  { %v804_v4 = vadd.f32 %v1579_v2, %v803_v3  ;;  %v1725_v21 = vpop.f32.mrb[17].mxu0 }
0x16c1   :  { %v806_v5 = vpop.f32.mrb[18].mxu0 }
0x16c2   :  { %810 = vst [vmem:[#allocation2] sm:$0xff] %v804_v4  ;;  %v807_v6 = vadd.f32 %v1579_v2, %v806_v5  ;;  %v1726_v7 = vpop.f32.mrb[19].mxu0 }
0x16c4   :  { %811 = vst [vmem:[#allocation2 + $0x8] sm:$0xff] %v807_v6 }
0x16c9   :  { %v812_v34 = vld [vmem:[#allocation2] sm:$0x3]  ;;  %v831_v24 = vld [vmem:[#allocation2 + $0x2] sm:$0x3]  ;;  %v919_v47 = vld [vmem:[#allocation2 + $0x4] sm:$0x3] }
0x16ca   :  { %1875 = vtanh.f32 %v812_v34  ;;  %v1583_v9 = vmul.f32 -1.442695, %v812_v34  ;;  %v991_v4 = vld [vmem:[#allocation2 + $0x6] sm:$0x3] }
0x16cc   :  { %1877 = vpow2.f32 %v1583_v9 }
0x16d4   :  { %v1876_v8 = vpop.eup %1875 }
0x16d5   :  { %821 = vrot.lane.b32.xlu0 %v1876_v8, %s2059_s1 }
0x16d6   :  { %v1878_v10 = vpop.eup %1877 }
0x16d7   :  { %v816_v11 = vadd.f32 1.0, %v1878_v10 }
0x16d9   :  { %1879 = vrcp.f32 %v816_v11 }
0x16e3   :  { %v1880_v12 = vpop.eup %1879 }
0x1747   :  { %v822_v13 = vpop.permute.xlu0 %821 }
0x1748   :  { %v824_v14 = vmul.f32 %v1880_v12, %v822_v13 }
0x174a   :  { %1881 = vtanh.f32 %v824_v14 }
0x1754   :  { %v1882_v17 = vpop.eup %1881 }
0x1755   :  { %827 = vrot.lane.b32.xlu1 %v1882_v17, %s2053_s22 }
0x17c7   :  { %v828_v18 = vpop.permute.xlu1 %827 }
0x17c8   :  { %v2333_v19 = vmul.f32 %v1880_v12, %v828_v18 }
0x17ca   :  { %v832_v22 = vpack.c.bf16 %v2333_v19, %v2333_v19 }
0x17cc   :  { %834 = vrot.lane.b32.xlu0 %v832_v22, %s2053_s22 }
0x17d0   :  { %899 = vrot.lane.b32.xlu0 %v824_v14, %s2059_s1 }
0x183e   :  { %v835_v23 = vpop.permute.xlu0 %834 }
0x183f   :  { %1732 = vmatmul.mubr.msk.bf16.vlgmr.msra.gmra.mrb[16].mxu1 %vm122_vm1, %v835_v23 }
0x1840   :  { %1744 = vmatpush3.bf16.msra.mxu1 %v2320_v15  ;;  %1747 = vmatprep.mubr.msk.bf16.mxu1 %vm2058_vm0, %v2057_v1 }
0x1841   :  { %1745 = vmatprep.subr.bf16.mxu1 %v2057_v1 }
0x1842   :  { %v900_v38 = vpop.permute.xlu0 %899 }
0x1844   :  { %1746 = vmatpush3.bf16.msra.mxu1 %v2323_v16 }
0x1845   :  { %1759 = vmatprep.subr.bf16.mxu1 %v2057_v1 }
0x1912   :  { %v885_v25 = vpop.f32.mrb[16].mxu1 }
0x1913   :  { %v886_v26 = vadd.f32 %v885_v25, %v831_v24  ;;  %v1733_v27 = vpop.f32.mrb[17].mxu1 }
0x1914   :  { %v888_v28 = vpop.f32.mrb[18].mxu1 }
0x1915   :  { %1883 = vtanh.f32 %v886_v26  ;;  %v1734_v29 = vpop.f32.mrb[19].mxu1  ;;  %v1587_v31 = vmul.f32 -1.442695, %v886_v26  ;;  %v1063_v28 = vld [vmem:[#allocation2 + $0x8] sm:$0x3] }
0x1917   :  { %1885 = vpow2.f32 %v1587_v31 }
0x191f   :  { %v1884_v30 = vpop.eup %1883 }
0x1920   :  { %904 = vrot.lane.b32.xlu1 %v1884_v30, %s2059_s1 }
0x1921   :  { %v1886_v32 = vpop.eup %1885 }
0x1922   :  { %v894_v33 = vadd.f32 1.0, %v1886_v32 }
0x1924   :  { %1887 = vrcp.f32 %v894_v33 }
0x192e   :  { %v1888_v35 = vpop.eup %1887 }
0x192f   :  { %v902_v39 = vmul.f32 %v1888_v35, %v900_v38 }
0x1992   :  { %v905_v36 = vpop.permute.xlu1 %904 }
0x1993   :  { %v907_v37 = vmul.f32 %v1888_v35, %v905_v36 }
0x1995   :  { %909 = vrot.lane.b32.xlu1 %v907_v37, %s2059_s1 }
0x1a07   :  { %v910_v40 = vpop.permute.xlu1 %909 }
0x1a08   :  { %v912_v41 = vadd.f32 %v910_v40, %v902_v39 }
0x1a0a   :  { %1889 = vtanh.f32 %v912_v41 }
0x1a14   :  { %v1890_v42 = vpop.eup %1889 }
0x1a15   :  { %915 = vrot.lane.b32.xlu0 %v1890_v42, %s2059_s1 }
0x1a87   :  { %v916_v43 = vpop.permute.xlu0 %915 }
0x1a88   :  { %v2349_v44 = vmul.f32 %v1888_v35, %v916_v43 }
0x1a8a   :  { %v920_v45 = vpack.c.bf16 %v2349_v44, %v2349_v44 }
0x1a8c   :  { %922 = vrot.lane.b32.xlu1 %v920_v45, %s2053_s22 }
0x1afe   :  { %v923_v46 = vpop.permute.xlu1 %922 }
0x1aff   :  { %1740 = vmatmul.mubr.msk.bf16.vlgmr.msra.gmra.mrb[20].mxu0 %vm122_vm1, %v923_v46 }
0x1b00   :  { %1752 = vmatpush3.bf16.msra.mxu0 %v2320_v15  ;;  %1755 = vmatprep.mubr.msk.bf16.mxu0 %vm2058_vm0, %v2057_v1 }
0x1b01   :  { %1753 = vmatprep.subr.bf16.mxu0 %v2057_v1 }
0x1b04   :  { %1754 = vmatpush3.bf16.msra.mxu0 %v2323_v16 }
0x1b05   :  { %1767 = vmatprep.subr.bf16.mxu0 %v2057_v1 }
0x1bd2   :  { %v961_v48 = vpop.f32.mrb[20].mxu0 }
0x1bd3   :  { %v962_v49 = vadd.f32 %v961_v48, %v919_v47  ;;  %v1741_v50 = vpop.f32.mrb[21].mxu0 }
0x1bd4   :  { %v964_v51 = vpop.f32.mrb[22].mxu0 }
0x1bd5   :  { %1891 = vtanh.f32 %v962_v49  ;;  %v1742_v52 = vpop.f32.mrb[23].mxu0  ;;  %v1589_v54 = vmul.f32 -1.442695, %v962_v49  ;;  %v1135_v51 = vld [vmem:[#allocation2 + $0xa] sm:$0x3] }
0x1bd7   :  { %1893 = vpow2.f32 %v1589_v54 }
0x1bdf   :  { %v1892_v53 = vpop.eup %1891 }
0x1be0   :  { %976 = vrot.lane.b32.xlu0 %v1892_v53, %s2059_s1 }
0x1be1   :  { %v1894_v55 = vpop.eup %1893 }
0x1be2   :  { %v970_v56 = vadd.f32 1.0, %v1894_v55 }
0x1be4   :  { %1895 = vrcp.f32 %v970_v56 }
0x1bee   :  { %v1896_v57 = vpop.eup %1895 }
0x1bef   :  { %v974_v60 = vmul.f32 %v1896_v57, %v912_v41 }
0x1c52   :  { %v977_v58 = vpop.permute.xlu0 %976 }
0x1c53   :  { %v979_v59 = vmul.f32 %v1896_v57, %v977_v58 }
0x1c55   :  { %981 = vrot.lane.b32.xlu1 %v979_v59, %s2059_s1 }
0x1cc7   :  { %v982_v61 = vpop.permute.xlu1 %981 }
0x1cc8   :  { %v984_v62 = vadd.f32 %v982_v61, %v974_v60 }
0x1cca   :  { %1897 = vtanh.f32 %v984_v62 }
0x1cd4   :  { %v1898_v63 = vpop.eup %1897 }
0x1cd5   :  { %987 = vrot.lane.b32.xlu0 %v1898_v63, %s2059_s1 }
0x1d47   :  { %v988_v20 = vpop.permute.xlu0 %987 }
0x1d48   :  { %v2364_v0 = vmul.f32 %v1896_v57, %v988_v20 }
0x1d4a   :  { %v992_v2 = vpack.c.bf16 %v2364_v0, %v2364_v0 }
0x1d4c   :  { %994 = vrot.lane.b32.xlu1 %v992_v2, %s2053_s22 }
0x1dbe   :  { %v995_v3 = vpop.permute.xlu1 %994 }
0x1dbf   :  { %1748 = vmatmul.mubr.msk.bf16.vlgmr.msra.gmra.mrb[20].mxu1 %vm122_vm1, %v995_v3 }
0x1dc0   :  { %1760 = vmatpush3.bf16.msra.mxu1 %v2320_v15  ;;  %1763 = vmatprep.mubr.msk.bf16.mxu1 %vm2058_vm0, %v2057_v1 }
0x1dc1   :  { %1761 = vmatprep.subr.bf16.mxu1 %v2057_v1 }
0x1dc4   :  { %1762 = vmatpush3.bf16.msra.mxu1 %v2323_v16 }
0x1dc5   :  { %1775 = vmatprep.subr.bf16.mxu1 %v2057_v1 }
0x1e92   :  { %v1033_v21 = vpop.f32.mrb[20].mxu1 }
0x1e93   :  { %v1034_v5 = vadd.f32 %v1033_v21, %v991_v4  ;;  %v1749_v6 = vpop.f32.mrb[21].mxu1 }
0x1e94   :  { %v1036_v7 = vpop.f32.mrb[22].mxu1  ;;  %v1207_v6 = vld [vmem:[#allocation2 + $0xc] sm:$0x3] }
0x1e95   :  { %1899 = vtanh.f32 %v1034_v5  ;;  %v1750_v34 = vpop.f32.mrb[23].mxu1  ;;  %v1591_v9 = vmul.f32 -1.442695, %v1034_v5 }
0x1e97   :  { %1901 = vpow2.f32 %v1591_v9 }
0x1e9f   :  { %v1900_v8 = vpop.eup %1899 }
0x1ea0   :  { %1048 = vrot.lane.b32.xlu0 %v1900_v8, %s2059_s1 }
0x1ea1   :  { %v1902_v10 = vpop.eup %1901 }
0x1ea2   :  { %v1042_v11 = vadd.f32 1.0, %v1902_v10 }
0x1ea4   :  { %1903 = vrcp.f32 %v1042_v11 }
0x1eae   :  { %v1904_v12 = vpop.eup %1903 }
0x1eaf   :  { %v1046_v17 = vmul.f32 %v1904_v12, %v984_v62 }
0x1f12   :  { %v1049_v13 = vpop.permute.xlu0 %1048 }
0x1f13   :  { %v1051_v14 = vmul.f32 %v1904_v12, %v1049_v13 }
0x1f15   :  { %1053 = vrot.lane.b32.xlu1 %v1051_v14, %s2059_s1 }
0x1f87   :  { %v1054_v18 = vpop.permute.xlu1 %1053 }
0x1f88   :  { %v1056_v22 = vadd.f32 %v1054_v18, %v1046_v17 }
0x1f8a   :  { %1905 = vtanh.f32 %v1056_v22 }
0x1f94   :  { %v1906_v23 = vpop.eup %1905 }
0x1f95   :  { %1059 = vrot.lane.b32.xlu0 %v1906_v23, %s2059_s1 }
0x2007   :  { %v1060_v24 = vpop.permute.xlu0 %1059 }
0x2008   :  { %v2379_v25 = vmul.f32 %v1904_v12, %v1060_v24 }
0x200a   :  { %v1064_v26 = vpack.c.bf16 %v2379_v25, %v2379_v25 }
0x200c   :  { %1066 = vrot.lane.b32.xlu1 %v1064_v26, %s2053_s22 }
0x207e   :  { %v1067_v27 = vpop.permute.xlu1 %1066 }
0x207f   :  { %1756 = vmatmul.mubr.msk.bf16.vlgmr.msra.gmra.mrb[24].mxu0 %vm122_vm1, %v1067_v27 }
0x2080   :  { %1768 = vmatpush3.bf16.msra.mxu0 %v2320_v15  ;;  %1771 = vmatprep.mubr.msk.bf16.mxu0 %vm2058_vm0, %v2057_v1 }
0x2081   :  { %1769 = vmatprep.subr.bf16.mxu0 %v2057_v1 }
0x2084   :  { %1770 = vmatpush3.bf16.msra.mxu0 %v2323_v16 }
0x2085   :  { %1783 = vmatprep.subr.bf16.mxu0 %v2057_v1 }
0x2152   :  { %v1105_v29 = vpop.f32.mrb[24].mxu0 }
0x2153   :  { %v1106_v30 = vadd.f32 %v1105_v29, %v1063_v28  ;;  %v1757_v31 = vpop.f32.mrb[25].mxu0 }
0x2154   :  { %v1108_v32 = vpop.f32.mrb[26].mxu0 }
0x2155   :  { %1907 = vtanh.f32 %v1106_v30  ;;  %v1758_v33 = vpop.f32.mrb[27].mxu0  ;;  %v1593_v36 = vmul.f32 -1.442695, %v1106_v30  ;;  %v1279_v32 = vld [vmem:[#allocation2 + $0xe] sm:$0x3] }
0x2157   :  { %1909 = vpow2.f32 %v1593_v36 }
0x215f   :  { %v1908_v35 = vpop.eup %1907 }
0x2160   :  { %1120 = vrot.lane.b32.xlu0 %v1908_v35, %s2059_s1 }
0x2161   :  { %v1910_v37 = vpop.eup %1909 }
0x2162   :  { %v1114_v38 = vadd.f32 1.0, %v1910_v37 }
0x2164   :  { %1911 = vrcp.f32 %v1114_v38 }
0x216e   :  { %v1912_v39 = vpop.eup %1911 }
0x216f   :  { %v1118_v42 = vmul.f32 %v1912_v39, %v1056_v22 }
0x21d2   :  { %v1121_v40 = vpop.permute.xlu0 %1120 }
0x21d3   :  { %v1123_v41 = vmul.f32 %v1912_v39, %v1121_v40 }
0x21d5   :  { %1125 = vrot.lane.b32.xlu1 %v1123_v41, %s2059_s1 }
0x2247   :  { %v1126_v43 = vpop.permute.xlu1 %1125 }
0x2248   :  { %v1128_v45 = vadd.f32 %v1126_v43, %v1118_v42 }
0x224a   :  { %1913 = vtanh.f32 %v1128_v45 }
0x2254   :  { %v1914_v46 = vpop.eup %1913 }
0x2255   :  { %1131 = vrot.lane.b32.xlu0 %v1914_v46, %s2059_s1 }
0x22c7   :  { %v1132_v47 = vpop.permute.xlu0 %1131 }
0x22c8   :  { %v2394_v48 = vmul.f32 %v1912_v39, %v1132_v47 }
0x22ca   :  { %v1136_v49 = vpack.c.bf16 %v2394_v48, %v2394_v48 }
0x22cc   :  { %1138 = vrot.lane.b32.xlu1 %v1136_v49, %s2053_s22 }
0x233e   :  { %v1139_v50 = vpop.permute.xlu1 %1138 }
0x233f   :  { %1764 = vmatmul.mubr.msk.bf16.vlgmr.msra.gmra.mrb[24].mxu1 %vm122_vm1, %v1139_v50 }
0x2340   :  { %1776 = vmatpush3.bf16.msra.mxu1 %v2320_v15  ;;  %1779 = vmatprep.mubr.msk.bf16.mxu1 %vm2058_vm0, %v2057_v1 }
0x2341   :  { %1777 = vmatprep.subr.bf16.mxu1 %v2057_v1 }
0x2344   :  { %1778 = vmatpush3.bf16.msra.mxu1 %v2323_v16 }
0x2412   :  { %v1177_v52 = vpop.f32.mrb[24].mxu1 }
0x2413   :  { %v1178_v53 = vadd.f32 %v1177_v52, %v1135_v51  ;;  %v1765_v54 = vpop.f32.mrb[25].mxu1 }
0x2414   :  { %v1180_v55 = vpop.f32.mrb[26].mxu1 }
0x2415   :  { %1915 = vtanh.f32 %v1178_v53  ;;  %v1766_v56 = vpop.f32.mrb[27].mxu1  ;;  %v1595_v58 = vmul.f32 -1.442695, %v1178_v53 }
0x2417   :  { %1917 = vpow2.f32 %v1595_v58 }
0x241f   :  { %v1916_v57 = vpop.eup %1915 }
0x2420   :  { %1192 = vrot.lane.b32.xlu0 %v1916_v57, %s2059_s1 }
0x2421   :  { %v1918_v15 = vpop.eup %1917 }
0x2422   :  { %v1186_v59 = vadd.f32 1.0, %v1918_v15 }
0x2424   :  { %1919 = vrcp.f32 %v1186_v59 }
0x242e   :  { %v1920_v60 = vpop.eup %1919 }
0x242f   :  { %v1190_v16 = vmul.f32 %v1920_v60, %v1128_v45 }
0x2492   :  { %v1193_v61 = vpop.permute.xlu0 %1192 }
0x2493   :  { %v1195_v62 = vmul.f32 %v1920_v60, %v1193_v61 }
0x2495   :  { %1197 = vrot.lane.b32.xlu1 %v1195_v62, %s2059_s1 }
0x2507   :  { %v1198_v63 = vpop.permute.xlu1 %1197 }
0x2508   :  { %v1200_v20 = vadd.f32 %v1198_v63, %v1190_v16 }
0x250a   :  { %1921 = vtanh.f32 %v1200_v20 }
0x2514   :  { %v1922_v2 = vpop.eup %1921 }
0x2515   :  { %1203 = vrot.lane.b32.xlu0 %v1922_v2, %s2059_s1 }
0x2587   :  { %v1204_v3 = vpop.permute.xlu0 %1203 }
0x2588   :  { %v2408_v4 = vmul.f32 %v1920_v60, %v1204_v3 }
0x258a   :  { %v1208_v21 = vpack.c.bf16 %v2408_v4, %v2408_v4 }
0x258c   :  { %1210 = vrot.lane.b32.xlu1 %v1208_v21, %s2053_s22 }
0x25fe   :  { %v1211_v5 = vpop.permute.xlu1 %1210 }
0x25ff   :  { %1772 = vmatmul.mubr.msk.bf16.vlgmr.msra.gmra.mrb[28].mxu0 %vm122_vm1, %v1211_v5 }
0x2600   :  { %1787 = vmatprep.mubr.msk.bf16.mxu0 %vm2058_vm0, %v2057_v1 }
0x26d2   :  { %v1249_v7 = vpop.f32.mrb[28].mxu0 }
0x26d3   :  { %v1250_v34 = vadd.f32 %v1249_v7, %v1207_v6  ;;  %v1773_v8 = vpop.f32.mrb[29].mxu0 }
0x26d4   :  { %v1252_v9 = vpop.f32.mrb[30].mxu0 }
0x26d5   :  { %1923 = vtanh.f32 %v1250_v34  ;;  %v1774_v10 = vpop.f32.mrb[31].mxu0  ;;  %v1597_v12 = vmul.f32 -1.442695, %v1250_v34 }
0x26d7   :  { %1925 = vpow2.f32 %v1597_v12  ;;  %v1809_v12 = vld [vmem:[%s2489_s7] sm:$0xff]  }
0x26d8   :  { %1784 = vmatpush3.bf16.msra.mxu0 %v1809_v12 }
0x26d9   :  { %1785 = vmatprep.subr.bf16.mxu0 %v2057_v1 }
0x26df   :  { %v1924_v11 = vpop.eup %1923 }
0x26e0   :  { %1264 = vrot.lane.b32.xlu0 %v1924_v11, %s2059_s1 }
0x26e1   :  { %v1926_v13 = vpop.eup %1925 }
0x26e2   :  { %v1258_v14 = vadd.f32 1.0, %v1926_v13  ;;  %v1810_v13 = vld [vmem:[%s2489_s7 + $0x8] sm:$0xff]  }
0x26e3   :  { %1786 = vmatpush3.bf16.msra.mxu0 %v1810_v13 }
0x26e4   :  { %1927 = vrcp.f32 %v1258_v14 }
0x26ee   :  { %v1928_v17 = vpop.eup %1927 }
0x26ef   :  { %v1262_v23 = vmul.f32 %v1928_v17, %v1200_v20 }
0x2752   :  { %v1265_v18 = vpop.permute.xlu0 %1264 }
0x2753   :  { %v1267_v22 = vmul.f32 %v1928_v17, %v1265_v18 }
0x2755   :  { %1269 = vrot.lane.b32.xlu1 %v1267_v22, %s2059_s1 }
0x27c7   :  { %v1270_v24 = vpop.permute.xlu1 %1269 }
0x27c8   :  { %v1272_v26 = vadd.f32 %v1270_v24, %v1262_v23 }
0x27ca   :  { %1929 = vtanh.f32 %v1272_v26 }
0x27d4   :  { %v1930_v27 = vpop.eup %1929 }
0x27d5   :  { %1275 = vrot.lane.b32.xlu0 %v1930_v27, %s2059_s1 }
0x2847   :  { %v1276_v28 = vpop.permute.xlu0 %1275 }
0x2848   :  { %v2419_v29 = vmul.f32 %v1928_v17, %v1276_v28 }
0x284a   :  { %v1280_v30 = vpack.c.bf16 %v2419_v29, %v2419_v29 }
0x284c   :  { %1282 = vrot.lane.b32.xlu1 %v1280_v30, %s2053_s22 }
0x28be   :  { %v1283_v31 = vpop.permute.xlu1 %1282 }
0x28bf   :  { %1780 = vmatmul.mubr.msk.bf16.vlgmr.msra.gmra.mrb[28].mxu1 %vm122_vm1, %v1283_v31 }
0x2992   :  { %v1321_v33 = vpop.f32.mrb[28].mxu1 }
0x2993   :  { %v1322_v35 = vadd.f32 %v1321_v33, %v1279_v32  ;;  %v1781_v36 = vpop.f32.mrb[29].mxu1 }
0x2994   :  { %v1324_v37 = vpop.f32.mrb[30].mxu1 }
0x2995   :  { %1931 = vtanh.f32 %v1322_v35  ;;  %v1782_v38 = vpop.f32.mrb[31].mxu1  ;;  %v1599_v40 = vmul.f32 -1.442695, %v1322_v35 }
0x2997   :  { %1933 = vpow2.f32 %v1599_v40 }
0x299f   :  { %v1932_v39 = vpop.eup %1931 }
0x29a0   :  { %1336 = vrot.lane.b32.xlu0 %v1932_v39, %s2059_s1 }
0x29a1   :  { %v1934_v41 = vpop.eup %1933 }
0x29a2   :  { %v1330_v42 = vadd.f32 1.0, %v1934_v41 }
0x29a4   :  { %1935 = vrcp.f32 %v1330_v42 }
0x29ae   :  { %v1936_v43 = vpop.eup %1935 }
0x29af   :  { %v1334_v47 = vmul.f32 %v1936_v43, %v1272_v26 }
0x2a12   :  { %v1337_v45 = vpop.permute.xlu0 %1336 }
0x2a13   :  { %v1339_v46 = vmul.f32 %v1936_v43, %v1337_v45 }
0x2a15   :  { %1341 = vrot.lane.b32.xlu1 %v1339_v46, %s2059_s1 }
0x2a87   :  { %v1342_v49 = vpop.permute.xlu1 %1341 }
0x2a88   :  { %v1344_v50 = vadd.f32 %v1342_v49, %v1334_v47 }
0x2a8a   :  { %1937 = vtanh.f32 %v1344_v50 }
0x2a94   :  { %v1938_v51 = vpop.eup %1937 }
0x2a95   :  { %1347 = vrot.lane.b32.xlu0 %v1938_v51, %s2059_s1 }
0x2b07   :  { %v1348_v52 = vpop.permute.xlu0 %1347 }
0x2b08   :  { %v2428_v53 = vmul.f32 %v1936_v43, %v1348_v52 }
0x2b0a   :  { %v1360_v54 = vmul.f32 %v2428_v53, %v2349_v44  ;;  %v1351_v55 = vmul.f32 %v2428_v53, %v2333_v19  ;;  %v1376_v56 = vmul.f32 %v2428_v53, %v2379_v25  ;;  %v1368_v57 = vmul.f32 %v2428_v53, %v2364_v0 }
0x2b0b   :  { %v1392_v58 = vmul.f32 %v2428_v53, %v2408_v4  ;;  %v1384_v15 = vmul.f32 %v2428_v53, %v2394_v48  ;;  %v1408_v59 = vmul.f32 %v2428_v53, %v2428_v53  ;;  %v1400_v60 = vmul.f32 %v2428_v53, %v2419_v29 }
0x2b0c   :  { %1362 = vrot.lane.b32.xlu0 %v1360_v54, %s2053_s22  ;;  %1353 = vrot.lane.b32.xlu1 %v1351_v55, %s2053_s22 }
0x2b10   :  { %1378 = vrot.lane.b32.xlu0 %v1376_v56, %s2053_s22  ;;  %1370 = vrot.lane.b32.xlu1 %v1368_v57, %s2053_s22 }
0x2b14   :  { %1394 = vrot.lane.b32.xlu0 %v1392_v58, %s2053_s22  ;;  %1386 = vrot.lane.b32.xlu1 %v1384_v15, %s2053_s22 }
0x2b18   :  { %1410 = vrot.lane.b32.xlu0 %v1408_v59, %s2053_s22  ;;  %1402 = vrot.lane.b32.xlu1 %v1400_v60, %s2053_s22 }
0x2b7e   :  { %v1363_v61 = vpop.permute.xlu0 %1362  ;;  %v1354_v62 = vpop.permute.xlu1 %1353 }
0x2b7f   :  { %v1365_v16 = vsel %vm1356_vm5, %v1363_v61, 0.0  ;;  %v1357_v63 = vsel %vm1356_vm5, %v1354_v62, 0.0 }
0x2b80   :  { %1366 = vadd.xlane.f32.xlu0 %v1365_v16  ;;  %1358 = vadd.xlane.f32.xlu1 %v1357_v63 }
0x2b82   :  { %v1379_v20 = vpop.permute.xlu0 %1378  ;;  %v1371_v2 = vpop.permute.xlu1 %1370 }
0x2b83   :  { %v1381_v3 = vsel %vm1356_vm5, %v1379_v20, 0.0  ;;  %v1373_v21 = vsel %vm1356_vm5, %v1371_v2, 0.0 }
0x2b84   :  { %1382 = vadd.xlane.f32.xlu1 %v1381_v3  ;;  %1374 = vadd.xlane.f32.xlu0 %v1373_v21 }
0x2b86   :  { %v1395_v5 = vpop.permute.xlu0 %1394  ;;  %v1387_v6 = vpop.permute.xlu1 %1386 }
0x2b87   :  { %v1397_v7 = vsel %vm1356_vm5, %v1395_v5, 0.0  ;;  %v1389_v34 = vsel %vm1356_vm5, %v1387_v6, 0.0 }
0x2b88   :  { %1398 = vadd.xlane.f32.xlu1 %v1397_v7  ;;  %1390 = vadd.xlane.f32.xlu0 %v1389_v34 }
0x2b8a   :  { %v1411_v8 = vpop.permute.xlu0 %1410  ;;  %v1403_v9 = vpop.permute.xlu1 %1402 }
0x2b8b   :  { %v1413_v10 = vsel %vm1356_vm5, %v1411_v8, 0.0  ;;  %v1405_v11 = vsel %vm1356_vm5, %v1403_v9, 0.0 }
0x2b8c   :  { %1414 = vadd.xlane.f32.xlu1 %v1413_v10  ;;  %1406 = vadd.xlane.f32.xlu0 %v1405_v11 }
0x2c0d   :  { %v1367_v14 = vpop.xlane.xlu0 %1366  ;;  %v1359_v17 = vpop.xlane.xlu1 %1358 }
0x2c0e   :  { %v1416_v18 = vmax.f32 %v1359_v17, %v1367_v14 }
0x2c11   :  { %v1375_v22 = vpop.xlane.xlu0 %1374  ;;  %v1383_v23 = vpop.xlane.xlu1 %1382 }
0x2c12   :  { %v1417_v24 = vmax.f32 %v1416_v18, %v1375_v22 }
0x2c14   :  { %v1418_v26 = vmax.f32 %v1417_v24, %v1383_v23 }
0x2c15   :  { %v1391_v27 = vpop.xlane.xlu0 %1390  ;;  %v1399_v28 = vpop.xlane.xlu1 %1398 }
0x2c16   :  { %v1419_v30 = vmax.f32 %v1418_v26, %v1391_v27 }
0x2c18   :  { %v1420_v31 = vmax.f32 %v1419_v30, %v1399_v28 }
0x2c19   :  { %v1407_v32 = vpop.xlane.xlu0 %1406  ;;  %v1415_v35 = vpop.xlane.xlu1 %1414 }
0x2c1a   :  { %v1421_v33 = vmax.f32 %v1420_v31, %v1407_v32 }
0x2c1c   :  { %v1422_v36 = vmax.f32 %v1421_v33, %v1415_v35  ;;  %v1600_v33 = vld [vmem:[#allocation3] ss:$0 sm:$0xff] }
0x2c1e   :  { %v1423_v37 = vsub.f32 %v1359_v17, %v1422_v36  ;;  %v1426_v38 = vsub.f32 %v1367_v14, %v1422_v36  ;;  %v1429_v39 = vsub.f32 %v1375_v22, %v1422_v36  ;;  %v1432_v1 = vsub.f32 %v1383_v23, %v1422_v36 }
0x2c1f   :  { %v1435_v43 = vsub.f32 %v1391_v27, %v1422_v36  ;;  %v1438_v46 = vsub.f32 %v1399_v28, %v1422_v36  ;;  %v1441_v49 = vsub.f32 %v1407_v32, %v1422_v36  ;;  %v1444_v51 = vsub.f32 %v1415_v35, %v1422_v36 }
0x2c20   :  { %v1424_v40 = vmul.f32 1.442695, %v1423_v37  ;;  %v1427_v41 = vmul.f32 1.442695, %v1426_v38  ;;  %v1430_v42 = vmul.f32 1.442695, %v1429_v39 }
0x2c21   :  { %v1433_v45 = vmul.f32 1.442695, %v1432_v1  ;;  %v1436_v47 = vmul.f32 1.442695, %v1435_v43  ;;  %v1439_v50 = vmul.f32 1.442695, %v1438_v46 }
0x2c22   :  { %1939 = vpow2.f32 %v1424_v40  ;;  %v1442_v52 = vmul.f32 1.442695, %v1441_v49  ;;  %v1445_v54 = vmul.f32 1.442695, %v1444_v51 }
0x2c23   :  { %1941 = vpow2.f32 %v1427_v41 }
0x2c24   :  { %1943 = vpow2.f32 %v1430_v42 }
0x2c25   :  { %1945 = vpow2.f32 %v1433_v45 }
0x2c26   :  { %1947 = vpow2.f32 %v1436_v47 }
0x2c27   :  { %1949 = vpow2.f32 %v1439_v50 }
0x2c28   :  { %1951 = vpow2.f32 %v1442_v52 }
0x2c29   :  { %1953 = vpow2.f32 %v1445_v54 }
0x2c2c   :  { %v1940_v55 = vpop.eup %1939 }
0x2c2d   :  { %v1942_v56 = vpop.eup %1941 }
0x2c2e   :  { %v1447_v57 = vadd.f32 %v1942_v56, %v1940_v55  ;;  %v1944_v58 = vpop.eup %1943 }
0x2c2f   :  { %v1946_v59 = vpop.eup %1945 }
0x2c30   :  { %v1448_v15 = vadd.f32 %v1944_v58, %v1447_v57  ;;  %v1948_v61 = vpop.eup %1947 }
0x2c31   :  { %v1950_v16 = vpop.eup %1949 }
0x2c32   :  { %v1449_v60 = vadd.f32 %v1946_v59, %v1448_v15  ;;  %v1952_v20 = vpop.eup %1951 }
0x2c33   :  { %v1954_v3 = vpop.eup %1953 }
0x2c34   :  { %v1450_v62 = vadd.f32 %v1948_v61, %v1449_v60 }
0x2c36   :  { %v1451_v63 = vadd.f32 %v1950_v16, %v1450_v62 }
0x2c38   :  { %v1452_v2 = vadd.f32 %v1952_v20, %v1451_v63 }
0x2c3a   :  { %v1453_v21 = vadd.f32 %v1954_v3, %v1452_v2 }
0x2c3c   :  { %1955 = vrcp.f32 %v1453_v21 }
0x2c46   :  { %v1956_v5 = vpop.eup %1955 }
0x2c47   :  { %v1455_v6 = vmul.f32 %v1956_v5, %v1940_v55  ;;  %v1457_v7 = vmul.f32 %v1956_v5, %v1942_v56  ;;  %v1460_v34 = vmul.f32 %v1956_v5, %v1944_v58  ;;  %v1463_v10 = vmul.f32 %v1956_v5, %v1946_v59 }
0x2c48   :  { %v1466_v13 = vmul.f32 %v1956_v5, %v1948_v61  ;;  %v1469_v18 = vmul.f32 %v1956_v5, %v1950_v16  ;;  %v1472_v24 = vmul.f32 %v1956_v5, %v1952_v20  ;;  %v1475_v28 = vmul.f32 %v1956_v5, %v1954_v3 }
0x2c49   :  { %v1456_v8 = vmul.f32 %v1455_v6, %v2333_v19  ;;  %v1458_v9 = vmul.f32 %v1457_v7, %v2349_v44  ;;  %v1461_v12 = vmul.f32 %v1460_v34, %v2364_v0  ;;  %v1464_v17 = vmul.f32 %v1463_v10, %v2379_v25 }
0x2c4a   :  { %v1467_v23 = vmul.f32 %v1466_v13, %v2394_v48  ;;  %v1470_v27 = vmul.f32 %v1469_v18, %v2408_v4  ;;  %v1473_v44 = vmul.f32 %v1472_v24, %v2419_v29  ;;  %v1476_v31 = vmul.f32 %v1475_v28, %v2428_v53 }
0x2c4b   :  { %v1459_v11 = vadd.f32 %v1458_v9, %v1456_v8 }
0x2c4d   :  { %v1462_v14 = vadd.f32 %v1461_v12, %v1459_v11 }
0x2c4f   :  { %v1465_v22 = vadd.f32 %v1464_v17, %v1462_v14 }
0x2c51   :  { %v1468_v26 = vadd.f32 %v1467_v23, %v1465_v22 }
0x2c53   :  { %v1471_v19 = vadd.f32 %v1470_v27, %v1468_v26 }
0x2c55   :  { %v1474_v30 = vadd.f32 %v1473_v44, %v1471_v19 }
0x2c57   :  { %v1477_v0 = vadd.f32 %v1476_v31, %v1474_v30 }
0x2c59   :  { %v1478_v32 = vpack.c.bf16 %v1477_v0, %v1477_v0 }
0x2c5b   :  { %1491 = vrot.lane.b32.xlu0 %v1478_v32, %s2053_s22 }
0x2ccd   :  { %v1492_v25 = vpop.permute.xlu0 %1491 }
0x2cce   :  { %1788 = vmatmul.mubr.msk.bf16.vlgmr.msra.gmra.mrb[32].mxu0 %vm122_vm1, %v1492_v25 }
0x2da1   :  { %v1542_v48 = vpop.f32.mrb[32].mxu0 }
0x2da2   :  { %v1543_v35 = vadd.f32 %v1600_v33, %v1542_v48  ;;  %v1789_v36 = vpop.f32.mrb[33].mxu0 }
0x2da3   :  { %v1545_v4 = vpop.f32.mrb[34].mxu0 }
0x2da4   :  { %1549 = vst.msk [vmem:[%s2491_s9] sm:$0x3] %vm1548_vm6, %v1543_v35  ;;  %v1790_v29 = vpop.f32.mrb[35].mxu0 }
0x2da5   :  { %1554 = vsyncpa [#allocation5], 1 }
0x2da6   :  { %1555 = vsyncpa [#allocation7], 1 }
0x2da7   :  { %1556 = vsyncpa [#allocation10], 1 }

</bundles_post_ra>
